<compile_context>
chip_gen: v7x
topology: tpu7x:2x2x1
jax: 0.10.0
libtpu: 0.0.40
codegen_flags: <defaults>
</compile_context>

<pallas_src>
import functools

import jax
import jax.numpy as jnp
from jax.experimental import pallas as pl
from jax.experimental.pallas import tpu as pltpu


def _dqn_kernel(x_ref, w1_ref, b1_ref, w2_ref, b2_ref, w3_ref, b3_ref, o_ref):
    # bf16 operands into the MXU, f32 accumulation; elementwise (bias/ReLU) in f32.
    x = x_ref[...].astype(jnp.bfloat16)

    h1 = jnp.dot(x, w1_ref[...], preferred_element_type=jnp.float32) + b1_ref[...]
    h1 = jnp.maximum(h1, 0.0)                                           # ReLU (f32)

    h2 = jnp.dot(h1.astype(jnp.bfloat16), w2_ref[...],
                 preferred_element_type=jnp.float32) + b2_ref[...]
    h2 = jnp.maximum(h2, 0.0)                                           # ReLU (f32)

    out = jnp.dot(h2.astype(jnp.bfloat16), w3_ref[...],
                  preferred_element_type=jnp.float32) + b3_ref[...]
    o_ref[...] = out.astype(o_ref.dtype)


def _num_tensorcores():
    """2 TensorCores per chip on v7x, 1 on v5e/v6e (conservative fallback: 1)."""
    try:
        kind = jax.devices()[0].device_kind.lower()
    except Exception:
        return 1
    return 2 if ("v7" in kind or "7x" in kind) else 1


_NUM_TC = _num_tensorcores()


@functools.partial(jax.jit, static_argnames=("block_b",))
def dqn_forward(state, w1, b1, w2, b2, w3, b3, *, block_b=None):
    B, d_in = state.shape
    d_out = w3.shape[1]

    if block_b is None:
        # One grid step per TensorCore: 1 step on v5e/v6e, 2 equal steps on v7x.
        # Only split when it yields equal, 8-aligned tiles (no ragged tail).
        if _NUM_TC > 1 and B % _NUM_TC == 0 and (B // _NUM_TC) % 8 == 0:
            block_b = B // _NUM_TC
        else:
            block_b = B
    block_b = min(block_b, B)

    # bf16 weights (matmul operands); biases stay f32 for the f32 bias-add.
    w1b, w2b, w3b = (w.astype(jnp.bfloat16) for w in (w1, w2, w3))
    b1f, b2f, b3f = (b.astype(jnp.float32) for b in (b1, b2, b3))

    grid = (pl.cdiv(B, block_b),)

    # Constant index_map -> weights/biases stay VMEM-resident across the grid.
    full = lambda a: pl.BlockSpec(a.shape, lambda i: (0, 0))

    out = pl.pallas_call(
        _dqn_kernel,
        out_shape=jax.ShapeDtypeStruct((B, d_out), state.dtype),
        grid_spec=pl.GridSpec(
            grid=grid,
            in_specs=[
                pl.BlockSpec((block_b, d_in), lambda i: (i, 0)),   # x tile over batch
                full(w1b), full(b1f),
                full(w2b), full(b2f),
                full(w3b), full(b3f),
            ],
            # Unpadded output: last block dim == full array dim (d_out), so the
            # (8,128) constraint is satisfied and no post-kernel slice is needed.
            out_specs=pl.BlockSpec((block_b, d_out), lambda i: (i, 0)),
        ),
        compiler_params=pltpu.CompilerParams(
            dimension_semantics=("parallel",),   # shards the 2-step grid across v7x TCs
        ),
    )(state, w1b, b1f, w2b, b2f, w3b, b3f)

    return out


def init_dqn_params(key, input_dim, output_dim):
    """Deterministic init mirroring nn.Linear's U(-1/sqrt(fan_in), 1/sqrt(fan_in))."""
    dims = [(input_dim, 128), (128, 256), (256, output_dim)]
    params = []
    for (fan_in, fan_out) in dims:
        key, kw, kb = jax.random.split(key, 3)
        bound = 1.0 / (fan_in ** 0.5)
        w = jax.random.uniform(kw, (fan_in, fan_out), jnp.float32, -bound, bound)
        b = jax.random.uniform(kb, (1, fan_out), jnp.float32, -bound, bound)
        params += [w, b]
    return tuple(params)


def dqn_reference(state, w1, b1, w2, b2, w3, b3):
    h1 = jnp.maximum(state @ w1 + b1, 0.0)
    h2 = jnp.maximum(h1 @ w2 + b2, 0.0)
    return h2 @ w3 + b3


if __name__ == "__main__":
    key = jax.random.PRNGKey(0)
    k_params, k_state = jax.random.split(key)

    INPUT_DIM = 32     # input_dim[0] in the PyTorch module
    OUTPUT_DIM = 8     # output_dim (number of actions)
    BATCH = 512        # even 8-aligned split: 1 step on v5e/v6e, 2x256 on v7x

    params = init_dqn_params(k_params, INPUT_DIM, OUTPUT_DIM)
    state = jax.random.normal(k_state, (BATCH, INPUT_DIM), jnp.float32)

    out = dqn_forward(state, *params)
    out = jax.block_until_ready(out)

    ref = dqn_reference(state, *params)
    assert out.shape == (BATCH, OUTPUT_DIM), out.shape
    # bf16 matmul operands (f32 accumulation) -> loosen tolerance vs f32 reference.
    assert jnp.allclose(out, ref, atol=3e-2, rtol=3e-2), "mismatch vs reference"

    print("KERNEL_OK")
</pallas_src>

<mosaic_0001>
module attributes {stable_mosaic.version = 11 : i64} {
  func.func @_dqn_kernel(%arg0: i32, %arg1: memref<512x32xf32, #tpu.memory_space<vmem>>, %arg2: memref<32x128xbf16, #tpu.memory_space<vmem>>, %arg3: memref<1x128xf32, #tpu.memory_space<vmem>>, %arg4: memref<128x256xbf16, #tpu.memory_space<vmem>>, %arg5: memref<1x256xf32, #tpu.memory_space<vmem>>, %arg6: memref<256x8xbf16, #tpu.memory_space<vmem>>, %arg7: memref<1x8xf32, #tpu.memory_space<vmem>>, %arg8: memref<512x8xf32, #tpu.memory_space<vmem>>) attributes {dimension_semantics = [#tpu.dimension_semantics<parallel>], iteration_bounds = array<i64: 1>, scalar_prefetch = 0 : i64, scratch_operands = 0 : i64, tpu.core_type = #tpu.core_type<tc>, window_params = [{transform_indices = @transform_0, window_bounds = array<i64: 512, 32>}, {pipeline_mode = #tpu.pipeline_mode<synchronous>, transform_indices = @transform_1, window_bounds = array<i64: 32, 128>}, {pipeline_mode = #tpu.pipeline_mode<synchronous>, transform_indices = @transform_2, window_bounds = array<i64: 1, 128>}, {pipeline_mode = #tpu.pipeline_mode<synchronous>, transform_indices = @transform_3, window_bounds = array<i64: 128, 256>}, {pipeline_mode = #tpu.pipeline_mode<synchronous>, transform_indices = @transform_4, window_bounds = array<i64: 1, 256>}, {pipeline_mode = #tpu.pipeline_mode<synchronous>, transform_indices = @transform_5, window_bounds = array<i64: 256, 8>}, {pipeline_mode = #tpu.pipeline_mode<synchronous>, transform_indices = @transform_6, window_bounds = array<i64: 1, 8>}, {transform_indices = @transform_7, window_bounds = array<i64: 512, 8>}]} {
    %c0 = arith.constant 0 : index
    %c0_0 = arith.constant 0 : index
    %0 = vector.load %arg1[%c0, %c0_0] : memref<512x32xf32, #tpu.memory_space<vmem>>, vector<512x32xf32>
    %1 = arith.truncf %0 : vector<512x32xf32> to vector<512x32xbf16>
    %c0_1 = arith.constant 0 : index
    %c0_2 = arith.constant 0 : index
    %2 = vector.load %arg2[%c0_1, %c0_2] : memref<32x128xbf16, #tpu.memory_space<vmem>>, vector<32x128xbf16>
    %cst = arith.constant dense<0.000000e+00> : vector<512x128xf32>
    %3 = tpu.matmul %1, %2, %cst {dimension_numbers = #tpu.dot_dimension_numbers<[1], [0], [0], [1], [0, 0, 1, 1], [], []>} : vector<512x32xbf16>, vector<32x128xbf16>, vector<512x128xf32> -> vector<512x128xf32>
    %c0_3 = arith.constant 0 : index
    %c0_4 = arith.constant 0 : index
    %4 = vector.load %arg3[%c0_3, %c0_4] : memref<1x128xf32, #tpu.memory_space<vmem>>, vector<1x128xf32>
    %5 = vector.broadcast %4 : vector<1x128xf32> to vector<512x128xf32>
    %6 = arith.addf %3, %5 : vector<512x128xf32>
    %cst_5 = arith.constant 0.000000e+00 : f32
    %7 = vector.broadcast %cst_5 : f32 to vector<512x128xf32>
    %8 = arith.maximumf %6, %7 : vector<512x128xf32>
    %9 = arith.truncf %8 : vector<512x128xf32> to vector<512x128xbf16>
    %c0_6 = arith.constant 0 : index
    %c0_7 = arith.constant 0 : index
    %10 = vector.load %arg4[%c0_6, %c0_7] : memref<128x256xbf16, #tpu.memory_space<vmem>>, vector<128x256xbf16>
    %cst_8 = arith.constant dense<0.000000e+00> : vector<512x256xf32>
    %11 = tpu.matmul %9, %10, %cst_8 {dimension_numbers = #tpu.dot_dimension_numbers<[1], [0], [0], [1], [0, 0, 1, 1], [], []>} : vector<512x128xbf16>, vector<128x256xbf16>, vector<512x256xf32> -> vector<512x256xf32>
    %c0_9 = arith.constant 0 : index
    %c0_10 = arith.constant 0 : index
    %12 = vector.load %arg5[%c0_9, %c0_10] : memref<1x256xf32, #tpu.memory_space<vmem>>, vector<1x256xf32>
    %13 = vector.broadcast %12 : vector<1x256xf32> to vector<512x256xf32>
    %14 = arith.addf %11, %13 : vector<512x256xf32>
    %cst_11 = arith.constant 0.000000e+00 : f32
    %15 = vector.broadcast %cst_11 : f32 to vector<512x256xf32>
    %16 = arith.maximumf %14, %15 : vector<512x256xf32>
    %17 = arith.truncf %16 : vector<512x256xf32> to vector<512x256xbf16>
    %c0_12 = arith.constant 0 : index
    %c0_13 = arith.constant 0 : index
    %18 = vector.load %arg6[%c0_12, %c0_13] : memref<256x8xbf16, #tpu.memory_space<vmem>>, vector<256x8xbf16>
    %cst_14 = arith.constant dense<0.000000e+00> : vector<512x8xf32>
    %19 = tpu.matmul %17, %18, %cst_14 {dimension_numbers = #tpu.dot_dimension_numbers<[1], [0], [0], [1], [0, 0, 1, 1], [], []>} : vector<512x256xbf16>, vector<256x8xbf16>, vector<512x8xf32> -> vector<512x8xf32>
    %c0_15 = arith.constant 0 : index
    %c0_16 = arith.constant 0 : index
    %20 = vector.load %arg7[%c0_15, %c0_16] : memref<1x8xf32, #tpu.memory_space<vmem>>, vector<1x8xf32>
    %21 = vector.broadcast %20 : vector<1x8xf32> to vector<512x8xf32>
    %22 = arith.addf %19, %21 : vector<512x8xf32>
    %c0_17 = arith.constant 0 : index
    %c0_18 = arith.constant 0 : index
    %23 = vector.load %arg8[%c0_17, %c0_18] : memref<512x8xf32, #tpu.memory_space<vmem>>, vector<512x8xf32>
    tpu.vector_store %arg8[%c0_17, %c0_18], %22 {strides = array<i32>} : memref<512x8xf32, #tpu.memory_space<vmem>>, vector<512x8xf32>,
    return
  }
  func.func @transform_0(%arg0: i32) -> (i32, i32) {
    %c0_i32 = arith.constant 0 : i32
    %c0_i32_0 = arith.constant 0 : i32
    return %arg0, %c0_i32 : i32, i32
  }
  func.func @transform_1(%arg0: i32) -> (i32, i32) {
    %c0_i32 = arith.constant 0 : i32
    %c0_i32_0 = arith.constant 0 : i32
    %c0_i32_1 = arith.constant 0 : i32
    return %c0_i32, %c0_i32_0 : i32, i32
  }
  func.func @transform_2(%arg0: i32) -> (i32, i32) {
    %c0_i32 = arith.constant 0 : i32
    %c0_i32_0 = arith.constant 0 : i32
    %c0_i32_1 = arith.constant 0 : i32
    return %c0_i32, %c0_i32_0 : i32, i32
  }
  func.func @transform_3(%arg0: i32) -> (i32, i32) {
    %c0_i32 = arith.constant 0 : i32
    %c0_i32_0 = arith.constant 0 : i32
    %c0_i32_1 = arith.constant 0 : i32
    return %c0_i32, %c0_i32_0 : i32, i32
  }
  func.func @transform_4(%arg0: i32) -> (i32, i32) {
    %c0_i32 = arith.constant 0 : i32
    %c0_i32_0 = arith.constant 0 : i32
    %c0_i32_1 = arith.constant 0 : i32
    return %c0_i32, %c0_i32_0 : i32, i32
  }
  func.func @transform_5(%arg0: i32) -> (i32, i32) {
    %c0_i32 = arith.constant 0 : i32
    %c0_i32_0 = arith.constant 0 : i32
    %c0_i32_1 = arith.constant 0 : i32
    return %c0_i32, %c0_i32_0 : i32, i32
  }
  func.func @transform_6(%arg0: i32) -> (i32, i32) {
    %c0_i32 = arith.constant 0 : i32
    %c0_i32_0 = arith.constant 0 : i32
    %c0_i32_1 = arith.constant 0 : i32
    return %c0_i32, %c0_i32_0 : i32, i32
  }
  func.func @transform_7(%arg0: i32) -> (i32, i32) {
    %c0_i32 = arith.constant 0 : i32
    %c0_i32_0 = arith.constant 0 : i32
    return %arg0, %c0_i32 : i32, i32
  }
}

</mosaic_0001>

<bundles_post_ra>
// kernel: dqn_forward.1
= control target key start
LH: loop header
LB: loop body
LE: loop exit
PB: predicated region body
PF: predicated region fallthrough
CT: control target
= control target key end

     0   :  { %vm146_vm0 = vcmask 261120   ;;  %vm1705_vm1 = vcmask 64512   ;;  %s3019_s1 = inlined_call_operand.vmem [shape: bf16[32,128], index: 1, kind: input, shape index: {}]   ;;  %s3020_s0 = inlined_call_operand.vmem [shape: f32[512,32], index: 0, kind: input, shape index: {}]   ;;  %s3021_s3 = inlined_call_operand.vmem [shape: bf16[128,256], index: 3, kind: input, shape index: {}]   ;;  %s3022_s2 = inlined_call_operand.vmem [shape: f32[1,128], index: 2, kind: input, shape index: {}]   ;;  %s3023_s5 = inlined_call_operand.vmem [shape: bf16[256,8], index: 5, kind: input, shape index: {}]   ;;  %s3024_s4 = inlined_call_operand.vmem [shape: f32[1,256], index: 4, kind: input, shape index: {}]   ;;  %s3025_s6 = inlined_call_operand.vmem [shape: f32[1,8], index: 6, kind: input, shape index: {}]   ;;  %s3026_s7 = inlined_call_operand.vmem [shape: f32[512,8], index: 7, kind: output, shape index: {}]  }
   0x1   :  { %v1949_v0 = vld [vmem:[%s3019_s1] sm:$0xff]   ;;  %v1950_v1 = vld [vmem:[%s3019_s1 + $0x8] sm:$0xff]   ;;  %v29_v5 = vld [vmem:[%s3020_s0 + $0x10] sm:$0xff] }
   0x2   :  { %1876 = vmatprep.subr.bf16.mxu0 %v1949_v0  ;;  %v27_v2 = vld [vmem:[%s3020_s0] sm:$0xff]  ;;  %v28_v3 = vld [vmem:[%s3020_s0 + $0x8] sm:$0xff]  ;;  %1944 = vmatprep.subr.bf16.mxu1 %v1949_v0  ;;  %v30_v6 = vld [vmem:[%s3020_s0 + $0x18] sm:$0xff] }
   0x3   :  { %1877 = vmatpush3.bf16.msra.mxu0 %v1949_v0  ;;  %v91_v4 = vpack.c.bf16 %v28_v3, %v27_v2  ;;  %1946 = vmatpush3.bf16.msra.mxu1 %v1949_v0  ;;  %v31_v7 = vld [vmem:[%s3020_s0 + $0x20] sm:$0xff]  ;;  %v32_v8 = vld [vmem:[%s3020_s0 + $0x28] sm:$0xff]  ;;  %v92_v9 = vpack.c.bf16 %v30_v6, %v29_v5  ;;  %v33_v11 = vld [vmem:[%s3020_s0 + $0x30] sm:$0xff] }
   0x4   :  { %1878 = vmatprep.subr.bf16.mxu0 %v1950_v1  ;;  %1945 = vmatprep.subr.bf16.mxu1 %v1950_v1  ;;  %v93_v10 = vpack.c.bf16 %v32_v8, %v31_v7  ;;  %v34_v12 = vld [vmem:[%s3020_s0 + $0x38] sm:$0xff]  ;;  %v35_v13 = vld [vmem:[%s3020_s0 + $0x40] sm:$0xff]  ;;  %v36_v14 = vld [vmem:[%s3020_s0 + $0x48] sm:$0xff] }
   0x5   :  { %1880 = vmatprep.mubr.msk.bf16.mxu0 %vm146_vm0, %v91_v4  ;;  %v59_v15 = vld [vmem:[%s3020_s0 + $0x100] sm:$0xff]  ;;  %v60_v16 = vld [vmem:[%s3020_s0 + $0x108] sm:$0xff]  ;;  %v61_v17 = vld [vmem:[%s3020_s0 + $0x110] sm:$0xff]  ;;  %v94_v19 = vpack.c.bf16 %v34_v12, %v33_v11  ;;  %v95_v24 = vpack.c.bf16 %v36_v14, %v35_v13 }
   0x6   :  { %v62_v18 = vld [vmem:[%s3020_s0 + $0x118] sm:$0xff]  ;;  %v107_v20 = vpack.c.bf16 %v60_v16, %v59_v15  ;;  %v63_v22 = vld [vmem:[%s3020_s0 + $0x120] sm:$0xff]  ;;  %v64_v23 = vld [vmem:[%s3020_s0 + $0x128] sm:$0xff] }
   0x7   :  { %1879 = vmatpush3.bf16.msra.mxu0 %v1950_v1  ;;  %1947 = vmatpush3.bf16.msra.mxu1 %v1950_v1  ;;  %v108_v21 = vpack.c.bf16 %v62_v18, %v61_v17  ;;  %v109_v25 = vpack.c.bf16 %v64_v23, %v63_v22  ;;  %v1951_v26 = vld [vmem:[%s3021_s3] ss:$8 sps:$4 sm:$0xff]   ;;  %v37_v27 = vld [vmem:[%s3020_s0 + $0x50] sm:$0xff]  ;;  %v38_v28 = vld [vmem:[%s3020_s0 + $0x58] sm:$0xff] }
   0x8   :  { %1912 = vmatprep.mubr.msk.bf16.mxu1 %vm146_vm0, %v107_v20  ;;  %v65_v29 = vld [vmem:[%s3020_s0 + $0x130] sm:$0xff]  ;;  %v1953_v30 = vld [vmem:[%s3021_s3 + $0x4] ss:$8 sps:$4 sm:$0xff]   ;;  %v66_v33 = vld [vmem:[%s3020_s0 + $0x138] sm:$0xff]  ;;  %v96_v40 = vpack.c.bf16 %v38_v28, %v37_v27 }
   0x9   :  { %v39_v31 = vld [vmem:[%s3020_s0 + $0x60] sm:$0xff]  ;;  %v40_v32 = vld [vmem:[%s3020_s0 + $0x68] sm:$0xff]  ;;  %736 = vmatprep.subr.bf16.mxu1 %v1953_v30  ;;  %v1956_v36 = vld [vmem:[%s3021_s3 + $0x14] ss:$8 sps:$4 sm:$0xff]   ;;  %v110_v38 = vpack.c.bf16 %v66_v33, %v65_v29 }
   0xa   :  { %1881 = vmatmul.mubr.msk.bf16.vlgmr.msra.gmra.mrb[0].mxu0 %vm146_vm0, %v92_v9  ;;  %1913 = vmatmul.mubr.msk.bf16.vlgmr.msra.gmra.mrb[0].mxu1 %vm146_vm0, %v108_v21  ;;  %v67_v34 = vld [vmem:[%s3020_s0 + $0x140] sm:$0xff]  ;;  %v68_v35 = vld [vmem:[%s3020_s0 + $0x148] sm:$0xff]  ;;  %v1954_v37 = vld [vmem:[%s3021_s3 + $0x10] ss:$8 sps:$4 sm:$0xff]   ;;  %v97_v42 = vpack.c.bf16 %v40_v32, %v39_v31 }
   0xb   :  { %1884 = vmatprep.mubr.msk.bf16.mxu0 %vm146_vm0, %v93_v10  ;;  %1916 = vmatprep.mubr.msk.bf16.mxu1 %vm146_vm0, %v109_v25  ;;  %v1959_v39 = vld [vmem:[%s3021_s3 + $0x24] ss:$8 sps:$4 sm:$0xff]   ;;  %v111_v41 = vpack.c.bf16 %v68_v35, %v67_v34  ;;  %v1957_v43 = vld [vmem:[%s3021_s3 + $0x20] ss:$8 sps:$4 sm:$0xff]   ;;  %v41_v44 = vld [vmem:[%s3020_s0 + $0x70] sm:$0xff] }
   0xc   :  { %737 = vmatpush1.bf16.msra.mxu1 %v1951_v26  ;;  %v42_v45 = vld [vmem:[%s3020_s0 + $0x78] sm:$0xff]  ;;  %v69_v47 = vld [vmem:[%s3020_s0 + $0x150] sm:$0xff]  ;;  %v71_v49 = vld [vmem:[%s3020_s0 + $0x160] sm:$0xff] }
   0xd   :  { %738 = vmatprep.subr.bf16.mxu1 %v1956_v36  ;;  %v1962_v46 = vld [vmem:[%s3021_s3 + $0x34] ss:$8 sps:$4 sm:$0xff]   ;;  %v72_v50 = vld [vmem:[%s3020_s0 + $0x168] sm:$0xff]  ;;  %v43_v51 = vld [vmem:[%s3020_s0 + $0x80] sm:$0xff]  ;;  %v98_v56 = vpack.c.bf16 %v42_v45, %v41_v44 }
   0xe   :  { %v70_v48 = vld [vmem:[%s3020_s0 + $0x158] sm:$0xff]  ;;  %v44_v52 = vld [vmem:[%s3020_s0 + $0x88] sm:$0xff]  ;;  %v113_v57 = vpack.c.bf16 %v72_v50, %v71_v49  ;;  %v45_v61 = vld [vmem:[%s3020_s0 + $0x90] sm:$0xff]  ;;  %v1991_v50 = vmov 0  }
   0xf   :  { %v1960_v53 = vld [vmem:[%s3021_s3 + $0x30] ss:$8 sps:$4 sm:$0xff]   ;;  %v112_v54 = vpack.c.bf16 %v70_v48, %v69_v47  ;;  %v1965_v55 = vld [vmem:[%s3021_s3 + $0x44] ss:$8 sps:$4 sm:$0xff]   ;;  %v99_v58 = vpack.c.bf16 %v44_v52, %v43_v51  ;;  %v1963_v59 = vld [vmem:[%s3021_s3 + $0x40] ss:$8 sps:$4 sm:$0xff]   ;;  %1416 = vmatprep.subr.bf16.mxu0 %v1991_v50 }
  0x10   :  { %739 = vmatpush1.bf16.msra.mxu1 %v1954_v37  ;;  %v1968_v60 = vld [vmem:[%s3021_s3 + $0x54] ss:$8 sps:$4 sm:$0xff]   ;;  %v75_v1 = vld [vmem:[%s3020_s0 + $0x180] sm:$0xff]  ;;  %v76_v2 = vld [vmem:[%s3020_s0 + $0x188] sm:$0xff] }
  0x11   :  { %740 = vmatprep.subr.bf16.mxu1 %v1959_v39  ;;  %v73_v62 = vld [vmem:[%s3020_s0 + $0x170] sm:$0xff]  ;;  %v74_v63 = vld [vmem:[%s3020_s0 + $0x178] sm:$0xff]  ;;  %v47_v3 = vld [vmem:[%s3020_s0 + $0xa0] sm:$0xff]  ;;  %v115_v9 = vpack.c.bf16 %v76_v2, %v75_v1 }
  0x12   :  { %1885 = vmatmul.mubr.msk.bf16.gmra.mrb[4].mxu0 %vm146_vm0, %v94_v19  ;;  %1917 = vmatmul.mubr.msk.bf16.gmra.mrb[4].mxu1 %vm146_vm0, %v110_v38  ;;  %v46_v0 = vld [vmem:[%s3020_s0 + $0x98] sm:$0xff]  ;;  %v48_v4 = vld [vmem:[%s3020_s0 + $0xa8] sm:$0xff]  ;;  %v114_v6 = vpack.c.bf16 %v74_v63, %v73_v62  ;;  %v49_v12 = vld [vmem:[%s3020_s0 + $0xb0] sm:$0xff] }
  0x13   :  { %1888 = vmatprep.mubr.msk.bf16.mxu0 %vm146_vm0, %v95_v24  ;;  %1920 = vmatprep.mubr.msk.bf16.mxu1 %vm146_vm0, %v111_v41  ;;  %v1966_v5 = vld [vmem:[%s3021_s3 + $0x50] ss:$8 sps:$4 sm:$0xff]   ;;  %v1971_v7 = vld [vmem:[%s3021_s3 + $0x64] ss:$8 sps:$4 sm:$0xff]   ;;  %v100_v8 = vpack.c.bf16 %v46_v0, %v45_v61  ;;  %v101_v10 = vpack.c.bf16 %v48_v4, %v47_v3  ;;  %v1969_v11 = vld [vmem:[%s3021_s3 + $0x60] ss:$8 sps:$4 sm:$0xff]  }
  0x14   :  { %741 = vmatpush1.bf16.msra.mxu1 %v1957_v43  ;;  %v77_v13 = vld [vmem:[%s3020_s0 + $0x190] sm:$0xff]  ;;  %v78_v14 = vld [vmem:[%s3020_s0 + $0x198] sm:$0xff]  ;;  %v79_v16 = vld [vmem:[%s3020_s0 + $0x1a0] sm:$0xff] }
  0x15   :  { %742 = vmatprep.subr.bf16.mxu1 %v1962_v46  ;;  %v50_v15 = vld [vmem:[%s3020_s0 + $0xb8] sm:$0xff]  ;;  %v80_v17 = vld [vmem:[%s3020_s0 + $0x1a8] sm:$0xff]  ;;  %v51_v18 = vld [vmem:[%s3020_s0 + $0xc0] sm:$0xff]  ;;  %v116_v20 = vpack.c.bf16 %v78_v14, %v77_v13 }
  0x16   :  { %v52_v19 = vld [vmem:[%s3020_s0 + $0xc8] sm:$0xff]  ;;  %v102_v21 = vpack.c.bf16 %v50_v15, %v49_v12  ;;  %v117_v22 = vpack.c.bf16 %v80_v17, %v79_v16  ;;  %v53_v24 = vld [vmem:[%s3020_s0 + $0xd0] sm:$0xff]  ;;  %v82_v26 = vld [vmem:[%s3020_s0 + $0x1b8] sm:$0xff] }
  0x17   :  { %v103_v23 = vpack.c.bf16 %v52_v19, %v51_v18  ;;  %v81_v25 = vld [vmem:[%s3020_s0 + $0x1b0] sm:$0xff]  ;;  %v54_v27 = vld [vmem:[%s3020_s0 + $0xd8] sm:$0xff]  ;;  %v83_v28 = vld [vmem:[%s3020_s0 + $0x1c0] sm:$0xff] }
  0x18   :  { %743 = vmatpush1.bf16.msra.mxu1 %v1960_v53  ;;  %v84_v29 = vld [vmem:[%s3020_s0 + $0x1c8] sm:$0xff]  ;;  %v55_v30 = vld [vmem:[%s3020_s0 + $0xe0] sm:$0xff]  ;;  %v118_v32 = vpack.c.bf16 %v82_v26, %v81_v25  ;;  %v104_v33 = vpack.c.bf16 %v54_v27, %v53_v24  ;;  %v57_v36 = vld [vmem:[%s3020_s0 + $0xf0] sm:$0xff] }
  0x19   :  { %744 = vmatprep.subr.bf16.mxu1 %v1965_v55  ;;  %v56_v31 = vld [vmem:[%s3020_s0 + $0xe8] sm:$0xff]  ;;  %v119_v34 = vpack.c.bf16 %v84_v29, %v83_v28  ;;  %v85_v37 = vld [vmem:[%s3020_s0 + $0x1d0] sm:$0xff]  ;;  %v86_v38 = vld [vmem:[%s3020_s0 + $0x1d8] sm:$0xff] }
  0x1a   :  { %1889 = vmatmul.mubr.msk.bf16.gmra.mrb[8].mxu0 %vm146_vm0, %v96_v40  ;;  %1921 = vmatmul.mubr.msk.bf16.gmra.mrb[8].mxu1 %vm146_vm0, %v112_v54  ;;  %v105_v35 = vpack.c.bf16 %v56_v31, %v55_v30  ;;  %v58_v39 = vld [vmem:[%s3020_s0 + $0xf8] sm:$0xff]  ;;  %v87_v40 = vld [vmem:[%s3020_s0 + $0x1e0] sm:$0xff]  ;;  %v88_v41 = vld [vmem:[%s3020_s0 + $0x1e8] sm:$0xff] }
  0x1b   :  { %1892 = vmatprep.mubr.msk.bf16.mxu0 %vm146_vm0, %v97_v42  ;;  %1924 = vmatprep.mubr.msk.bf16.mxu1 %vm146_vm0, %v113_v57  ;;  %v120_v42 = vpack.c.bf16 %v86_v38, %v85_v37  ;;  %v106_v43 = vpack.c.bf16 %v58_v39, %v57_v36  ;;  %v121_v44 = vpack.c.bf16 %v88_v41, %v87_v40  ;;  %v89_v45 = vld [vmem:[%s3020_s0 + $0x1f0] sm:$0xff]  ;;  %v90_v46 = vld [vmem:[%s3020_s0 + $0x1f8] sm:$0xff]  ;;  %v2315_v51 = vld [vmem:[%s3022_s2] ss:$0 sm:$0xff] }
  0x1c   :  { %745 = vmatpush1.bf16.msra.mxu1 %v1963_v59  ;;  %v122_v47 = vpack.c.bf16 %v90_v46, %v89_v45  ;;  %v1972_v48 = vld [vmem:[%s3021_s3 + $0x70] ss:$8 sps:$4 sm:$0xff]   ;;  %v1974_v49 = vld [vmem:[%s3021_s3 + $0x74] ss:$8 sps:$4 sm:$0xff]  }
  0x1d   :  { %746 = vmatprep.subr.bf16.mxu1 %v1968_v60 }
  0x20   :  { %747 = vmatpush1.bf16.msra.mxu1 %v1966_v5 }
  0x21   :  { %748 = vmatprep.subr.bf16.mxu1 %v1971_v7 }
  0x22   :  { %1893 = vmatmul.mubr.msk.bf16.gmra.mrb[12].mxu0 %vm146_vm0, %v98_v56  ;;  %1925 = vmatmul.mubr.msk.bf16.gmra.mrb[12].mxu1 %vm146_vm0, %v114_v6 }
  0x23   :  { %1896 = vmatprep.mubr.msk.bf16.mxu0 %vm146_vm0, %v99_v58  ;;  %1928 = vmatprep.mubr.msk.bf16.mxu1 %vm146_vm0, %v115_v9 }
  0x24   :  { %749 = vmatpush1.bf16.msra.mxu1 %v1969_v11 }
  0x25   :  { %750 = vmatprep.subr.bf16.mxu1 %v1974_v49 }
  0x28   :  { %751 = vmatpush1.bf16.msra.mxu1 %v1972_v48 }
  0x2a   :  { %1897 = vmatmul.mubr.msk.bf16.gmra.mrb[16].mxu0 %vm146_vm0, %v100_v8  ;;  %1929 = vmatmul.mubr.msk.bf16.gmra.mrb[16].mxu1 %vm146_vm0, %v116_v20 }
  0x2b   :  { %1900 = vmatprep.mubr.msk.bf16.mxu0 %vm146_vm0, %v101_v10  ;;  %1932 = vmatprep.mubr.msk.bf16.mxu1 %vm146_vm0, %v117_v22 }
  0x32   :  { %1901 = vmatmul.mubr.msk.bf16.gmra.mrb[20].mxu0 %vm146_vm0, %v102_v21  ;;  %1933 = vmatmul.mubr.msk.bf16.gmra.mrb[20].mxu1 %vm146_vm0, %v118_v32 }
  0x33   :  { %1904 = vmatprep.mubr.msk.bf16.mxu0 %vm146_vm0, %v103_v23  ;;  %1936 = vmatprep.mubr.msk.bf16.mxu1 %vm146_vm0, %v119_v34 }
  0x3a   :  { %1905 = vmatmul.mubr.msk.bf16.gmra.mrb[24].mxu0 %vm146_vm0, %v104_v33  ;;  %1937 = vmatmul.mubr.msk.bf16.gmra.mrb[24].mxu1 %vm146_vm0, %v120_v42 }
  0x3b   :  { %1908 = vmatprep.mubr.msk.bf16.mxu0 %vm146_vm0, %v105_v35  ;;  %1940 = vmatprep.mubr.msk.bf16.mxu1 %vm146_vm0, %v121_v44 }
  0x42   :  { %1909 = vmatmul.mubr.msk.bf16.gmra.mrb[28].mxu0 %vm146_vm0, %v106_v43  ;;  %1941 = vmatmul.mubr.msk.bf16.gmra.mrb[28].mxu1 %vm146_vm0, %v122_v47 }
  0x43   :  { %768 = vmatprep.mubr.bf16.mxu1 %v1991_v50 }
  0xdd   :  { %v1882_v52 = vpop.f32.mrb[0].mxu0  ;;  %v1914_v1 = vpop.f32.mrb[0].mxu1 }
  0xde   :  { %v286_v53 = vadd.f32 %v1882_v52, %v2315_v51  ;;  %v277_v54 = vpop.f32.mrb[1].mxu0  ;;  %v414_v4 = vadd.f32 %v1914_v1, %v2315_v51  ;;  %v405_v5 = vpop.f32.mrb[1].mxu1 }
  0xdf   :  { %v278_v55 = vadd.f32 %v2315_v51, %v277_v54  ;;  %v1883_v56 = vpop.f32.mrb[2].mxu0  ;;  %v406_v8 = vadd.f32 %v2315_v51, %v405_v5  ;;  %v1915_v9 = vpop.f32.mrb[2].mxu1 }
  0xe0   :  { %v289_v57 = vadd.f32 %v1883_v56, %v2315_v51  ;;  %v280_v58 = vpop.f32.mrb[3].mxu0  ;;  %v534_v60 = vmax.f32 %v286_v53, 0.0  ;;  %v566_v12 = vmax.f32 %v414_v4, 0.0  ;;  %v417_v13 = vadd.f32 %v1915_v9, %v2315_v51  ;;  %v408_v14 = vpop.f32.mrb[3].mxu1 }
  0xe1   :  { %v281_v59 = vadd.f32 %v2315_v51, %v280_v58  ;;  %v532_v62 = vmax.f32 %v278_v55, 0.0  ;;  %v564_v18 = vmax.f32 %v406_v8, 0.0  ;;  %v409_v19 = vadd.f32 %v2315_v51, %v408_v14 }
  0xe2   :  { %v535_v61 = vmax.f32 %v289_v57, 0.0  ;;  %v567_v22 = vmax.f32 %v417_v13, 0.0 }
  0xe3   :  { %v533_v63 = vmax.f32 %v281_v59, 0.0  ;;  %v565_v24 = vmax.f32 %v409_v19, 0.0 }
  0xe4   :  { %v597_v0 = vpack.c.bf16 %v535_v61, %v534_v60  ;;  %v2330_v26 = vpack.c.bf16 %v567_v22, %v566_v12 }
  0xe5   :  { %v596_v2 = vpack.c.bf16 %v533_v63, %v532_v62  ;;  %v1886_v3 = vpop.f32.mrb[4].mxu0  ;;  %v2334_v28 = vpack.c.bf16 %v565_v24, %v564_v18  ;;  %v1918_v29 = vpop.f32.mrb[4].mxu1 }
  0xe6   :  { %v302_v6 = vadd.f32 %v1886_v3, %v2315_v51  ;;  %v293_v7 = vpop.f32.mrb[5].mxu0  ;;  %v430_v32 = vadd.f32 %v1918_v29, %v2315_v51  ;;  %v421_v33 = vpop.f32.mrb[5].mxu1 }
  0xe7   :  { %769 = vmatmul.mubr.bf16.vlgmr.msra.gmra.mrb[32].mxu1 %v596_v2  ;;  %v294_v10 = vadd.f32 %v2315_v51, %v293_v7  ;;  %v1887_v11 = vpop.f32.mrb[6].mxu0  ;;  %v422_v36 = vadd.f32 %v2315_v51, %v421_v33  ;;  %v1919_v37 = vpop.f32.mrb[6].mxu1 }
  0xe8   :  { %v538_v15 = vmax.f32 %v302_v6, 0.0  ;;  %v305_v16 = vadd.f32 %v1887_v11, %v2315_v51  ;;  %v296_v17 = vpop.f32.mrb[7].mxu0  ;;  %778 = vmatprep.mubr.bf16.mxu1 %v1991_v50  ;;  %v570_v40 = vmax.f32 %v430_v32, 0.0  ;;  %v433_v41 = vadd.f32 %v1919_v37, %v2315_v51  ;;  %v424_v42 = vpop.f32.mrb[7].mxu1  ;;  %v1975_v37 = vld [vmem:[%s3023_s5] sm:$0xff]  }
  0xe9   :  { %v536_v20 = vmax.f32 %v294_v10, 0.0  ;;  %v297_v21 = vadd.f32 %v2315_v51, %v296_v17  ;;  %v568_v46 = vmax.f32 %v422_v36, 0.0  ;;  %v425_v47 = vadd.f32 %v2315_v51, %v424_v42  ;;  %1417 = vmatpush1.bf16.msra.mxu0 %v1975_v37 }
  0xea   :  { %v539_v23 = vmax.f32 %v305_v16, 0.0  ;;  %v571_v52 = vmax.f32 %v433_v41, 0.0  ;;  %1418 = vmatprep.subr.bf16.mxu0 %v1991_v50 }
  0xeb   :  { %v537_v25 = vmax.f32 %v297_v21, 0.0  ;;  %v569_v54 = vmax.f32 %v425_v47, 0.0 }
  0xec   :  { %v2332_v27 = vpack.c.bf16 %v539_v23, %v538_v15  ;;  %v2345_v56 = vpack.c.bf16 %v571_v52, %v570_v40 }
  0xed   :  { %v598_v30 = vpack.c.bf16 %v537_v25, %v536_v20  ;;  %v1890_v31 = vpop.f32.mrb[8].mxu0  ;;  %v2349_v58 = vpack.c.bf16 %v569_v54, %v568_v46  ;;  %v1922_v1 = vpop.f32.mrb[8].mxu1  ;;  %v1976_v46 = vld [vmem:[%s3023_s5 + $0x8] sm:$0xff]  }
  0xee   :  { %v318_v34 = vadd.f32 %v1890_v31, %v2315_v51  ;;  %v309_v35 = vpop.f32.mrb[9].mxu0  ;;  %v446_v5 = vadd.f32 %v1922_v1, %v2315_v51  ;;  %v437_v6 = vpop.f32.mrb[9].mxu1  ;;  %1419 = vmatpush1.bf16.msra.mxu0 %v1976_v46 }
  0xef   :  { %779 = vmatmul.mubr.bf16.gmra.mrb[36].mxu1 %v597_v0  ;;  %v310_v38 = vadd.f32 %v2315_v51, %v309_v35  ;;  %v1891_v39 = vpop.f32.mrb[10].mxu0  ;;  %v438_v9 = vadd.f32 %v2315_v51, %v437_v6  ;;  %v1923_v10 = vpop.f32.mrb[10].mxu1  ;;  %1420 = vmatprep.subr.bf16.mxu0 %v1991_v50 }
  0xf0   :  { %788 = vmatprep.mubr.bf16.mxu1 %v1991_v50  ;;  %v542_v43 = vmax.f32 %v318_v34, 0.0  ;;  %v321_v44 = vadd.f32 %v1891_v39, %v2315_v51  ;;  %v312_v45 = vpop.f32.mrb[11].mxu0  ;;  %v574_v12 = vmax.f32 %v446_v5, 0.0  ;;  %v449_v13 = vadd.f32 %v1923_v10, %v2315_v51  ;;  %v440_v14 = vpop.f32.mrb[11].mxu1 }
  0xf1   :  { %v540_v48 = vmax.f32 %v310_v38, 0.0  ;;  %v313_v49 = vadd.f32 %v2315_v51, %v312_v45  ;;  %v572_v16 = vmax.f32 %v438_v9, 0.0  ;;  %v441_v17 = vadd.f32 %v2315_v51, %v440_v14 }
  0xf2   :  { %v543_v53 = vmax.f32 %v321_v44, 0.0  ;;  %v575_v19 = vmax.f32 %v449_v13, 0.0 }
  0xf3   :  { %v541_v55 = vmax.f32 %v313_v49, 0.0  ;;  %v573_v22 = vmax.f32 %v441_v17, 0.0  ;;  %v1978_v17 = vld [vmem:[%s3023_s5 + $0x18] sm:$0xff]  }
  0xf4   :  { %v2347_v57 = vpack.c.bf16 %v543_v53, %v542_v43  ;;  %v2365_v25 = vpack.c.bf16 %v575_v19, %v574_v12 }
  0xf5   :  { %v600_v59 = vpack.c.bf16 %v541_v55, %v540_v48  ;;  %v1894_v60 = vpop.f32.mrb[12].mxu0  ;;  %v2369_v31 = vpack.c.bf16 %v573_v22, %v572_v16  ;;  %v1926_v47 = vpop.f32.mrb[12].mxu1  ;;  %v1977_v55 = vld [vmem:[%s3023_s5 + $0x10] sm:$0xff]  }
  0xf6   :  { %v334_v61 = vadd.f32 %v1894_v60, %v2315_v51  ;;  %v325_v62 = vpop.f32.mrb[13].mxu0  ;;  %v462_v53 = vadd.f32 %v1926_v47, %v2315_v51  ;;  %v453_v54 = vpop.f32.mrb[13].mxu1  ;;  %1421 = vmatpush1.bf16.msra.mxu0 %v1977_v55  ;;  %v1981_v55 = vld [vmem:[%s3023_s5 + $0x30] sm:$0xff]  }
  0xf7   :  { %789 = vmatmul.mubr.bf16.gmra.mrb[40].mxu1 %v598_v30  ;;  %v326_v63 = vadd.f32 %v2315_v51, %v325_v62  ;;  %v1895_v0 = vpop.f32.mrb[14].mxu0  ;;  %v1927_v62 = vpop.f32.mrb[14].mxu1  ;;  %1422 = vmatprep.subr.bf16.mxu0 %v1991_v50 }
  0xf8   :  { %798 = vmatprep.mubr.bf16.mxu1 %v1991_v50  ;;  %v546_v2 = vmax.f32 %v334_v61, 0.0  ;;  %v337_v3 = vadd.f32 %v1895_v0, %v2315_v51  ;;  %v328_v4 = vpop.f32.mrb[15].mxu0  ;;  %v454_v61 = vadd.f32 %v2315_v51, %v453_v54  ;;  %v578_v0 = vmax.f32 %v462_v53, 0.0 }
  0xf9   :  { %v544_v7 = vmax.f32 %v326_v63, 0.0  ;;  %v329_v8 = vadd.f32 %v2315_v51, %v328_v4  ;;  %v465_v1 = vadd.f32 %v1927_v62, %v2315_v51 }
  0xfa   :  { %v547_v11 = vmax.f32 %v337_v3, 0.0  ;;  %v576_v4 = vmax.f32 %v454_v61, 0.0  ;;  %1423 = vmatpush1.bf16.msra.mxu0 %v1978_v17 }
  0xfb   :  { %v545_v15 = vmax.f32 %v329_v8, 0.0  ;;  %1424 = vmatprep.subr.bf16.mxu0 %v1991_v50 }
  0xfc   :  { %v2360_v18 = vpack.c.bf16 %v547_v11, %v546_v2  ;;  %v456_v2 = vpop.f32.mrb[15].mxu1 }
  0xfd   :  { %v2362_v20 = vpack.c.bf16 %v545_v15, %v544_v7  ;;  %v1898_v21 = vpop.f32.mrb[16].mxu0  ;;  %v457_v5 = vadd.f32 %v2315_v51, %v456_v2  ;;  %v579_v7 = vmax.f32 %v465_v1, 0.0 }
  0xfe   :  { %v350_v23 = vadd.f32 %v1898_v21, %v2315_v51  ;;  %v341_v24 = vpop.f32.mrb[17].mxu0 }
  0xff   :  { %799 = vmatmul.mubr.bf16.gmra.mrb[44].mxu1 %v2332_v27  ;;  %v342_v29 = vadd.f32 %v2315_v51, %v341_v24  ;;  %v1899_v30 = vpop.f32.mrb[18].mxu0  ;;  %v577_v10 = vmax.f32 %v457_v5, 0.0  ;;  %v2403_v13 = vpack.c.bf16 %v579_v7, %v578_v0 }
 0x100   :  { %808 = vmatprep.mubr.bf16.mxu1 %v1991_v50  ;;  %v550_v32 = vmax.f32 %v350_v23, 0.0  ;;  %v353_v33 = vadd.f32 %v1899_v30, %v2315_v51  ;;  %v344_v34 = vpop.f32.mrb[19].mxu0  ;;  %v1930_v23 = vpop.f32.mrb[16].mxu1 }
 0x101   :  { %v548_v35 = vmax.f32 %v342_v29, 0.0  ;;  %v345_v36 = vadd.f32 %v2315_v51, %v344_v34  ;;  %v2408_v16 = vpack.c.bf16 %v577_v10, %v576_v4  ;;  %v1982_v10 = vld [vmem:[%s3023_s5 + $0x38] sm:$0xff]  }
 0x102   :  { %v551_v38 = vmax.f32 %v353_v33, 0.0 }
 0x103   :  { %v549_v27 = vmax.f32 %v345_v36, 0.0  ;;  %v478_v36 = vadd.f32 %v1930_v23, %v2315_v51 }
 0x104   :  { %v2377_v39 = vpack.c.bf16 %v551_v38, %v550_v32 }
 0x105   :  { %v2380_v40 = vpack.c.bf16 %v549_v27, %v548_v35  ;;  %v1902_v41 = vpop.f32.mrb[20].mxu0 }
 0x106   :  { %v366_v42 = vadd.f32 %v1902_v41, %v2315_v51  ;;  %v357_v43 = vpop.f32.mrb[21].mxu0 }
 0x107   :  { %809 = vmatmul.mubr.bf16.gmra.mrb[48].mxu1 %v600_v59  ;;  %v358_v44 = vadd.f32 %v2315_v51, %v357_v43  ;;  %v1903_v45 = vpop.f32.mrb[22].mxu0  ;;  %v1980_v43 = vld [vmem:[%s3023_s5 + $0x28] sm:$0xff]  }
 0x108   :  { %818 = vmatprep.mubr.bf16.mxu1 %v1991_v50  ;;  %v554_v48 = vmax.f32 %v366_v42, 0.0  ;;  %v369_v49 = vadd.f32 %v1903_v45, %v2315_v51  ;;  %v360_v52 = vpop.f32.mrb[23].mxu0  ;;  %v469_v42 = vpop.f32.mrb[17].mxu1 }
 0x109   :  { %v552_v59 = vmax.f32 %v358_v44, 0.0  ;;  %v361_v60 = vadd.f32 %v2315_v51, %v360_v52  ;;  %v470_v47 = vadd.f32 %v2315_v51, %v469_v42  ;;  %v582_v52 = vmax.f32 %v478_v36, 0.0  ;;  %v1985_v42 = vld [vmem:[%s3023_s5 + $0x50] sm:$0xff]  }
 0x10a   :  { %v555_v63 = vmax.f32 %v369_v49, 0.0 }
 0x10b   :  { %v553_v3 = vmax.f32 %v361_v60, 0.0  ;;  %v580_v60 = vmax.f32 %v470_v47, 0.0 }
 0x10c   :  { %v2398_v6 = vpack.c.bf16 %v555_v63, %v554_v48  ;;  %v1931_v48 = vpop.f32.mrb[18].mxu1 }
 0x10d   :  { %v2400_v8 = vpack.c.bf16 %v553_v3, %v552_v59  ;;  %v1906_v9 = vpop.f32.mrb[24].mxu0  ;;  %v481_v53 = vadd.f32 %v1931_v48, %v2315_v51  ;;  %v472_v54 = vpop.f32.mrb[19].mxu1 }
 0x10e   :  { %v382_v11 = vadd.f32 %v1906_v9, %v2315_v51  ;;  %v373_v12 = vpop.f32.mrb[25].mxu0  ;;  %v473_v61 = vadd.f32 %v2315_v51, %v472_v54  ;;  %v1934_v62 = vpop.f32.mrb[20].mxu1 }
 0x10f   :  { %819 = vmatmul.mubr.bf16.gmra.mrb[52].mxu1 %v2347_v57  ;;  %v374_v14 = vadd.f32 %v2315_v51, %v373_v12  ;;  %v1907_v15 = vpop.f32.mrb[26].mxu0  ;;  %v1979_v57 = vld [vmem:[%s3023_s5 + $0x20] sm:$0xff]   ;;  %v583_v0 = vmax.f32 %v481_v53, 0.0  ;;  %v494_v5 = vadd.f32 %v1934_v62, %v2315_v51  ;;  %v485_v9 = vpop.f32.mrb[21].mxu1 }
 0x110   :  { %828 = vmatprep.mubr.bf16.mxu1 %v1991_v50  ;;  %v558_v19 = vmax.f32 %v382_v11, 0.0  ;;  %v385_v21 = vadd.f32 %v1907_v15, %v2315_v51  ;;  %v376_v22 = vpop.f32.mrb[27].mxu0  ;;  %1425 = vmatpush1.bf16.msra.mxu0 %v1979_v57  ;;  %v581_v2 = vmax.f32 %v473_v61, 0.0  ;;  %v486_v11 = vadd.f32 %v2315_v51, %v485_v9  ;;  %v1935_v12 = vpop.f32.mrb[22].mxu1  ;;  %v1987_v61 = vld [vmem:[%s3023_s5 + $0x60] sm:$0xff]   ;;  %v1988_v9 = vld [vmem:[%s3023_s5 + $0x68] sm:$0xff]  }
 0x111   :  { %v556_v24 = vmax.f32 %v374_v14, 0.0  ;;  %v377_v29 = vadd.f32 %v2315_v51, %v376_v22  ;;  %1426 = vmatprep.subr.bf16.mxu0 %v1991_v50  ;;  %v2446_v4 = vpack.c.bf16 %v583_v0, %v582_v52  ;;  %v586_v14 = vmax.f32 %v494_v5, 0.0  ;;  %v488_v17 = vpop.f32.mrb[23].mxu1  ;;  %v1986_v52 = vld [vmem:[%s3023_s5 + $0x58] sm:$0xff]  }
 0x112   :  { %v559_v30 = vmax.f32 %v385_v21, 0.0  ;;  %v2449_v7 = vpack.c.bf16 %v581_v2, %v580_v60  ;;  %v497_v15 = vadd.f32 %v1935_v12, %v2315_v51  ;;  %v489_v21 = vadd.f32 %v2315_v51, %v488_v17  ;;  %v1938_v22 = vpop.f32.mrb[24].mxu1 }
 0x113   :  { %v557_v32 = vmax.f32 %v377_v29, 0.0  ;;  %v510_v57 = vadd.f32 %v1938_v22, %v2315_v51 }
 0x114   :  { %v2420_v33 = vpack.c.bf16 %v559_v30, %v558_v19  ;;  %1427 = vmatpush1.bf16.msra.mxu0 %v1980_v43  ;;  %v1983_v19 = vld [vmem:[%s3023_s5 + $0x40] sm:$0xff]   ;;  %v587_v23 = vmax.f32 %v497_v15, 0.0 }
 0x115   :  { %v2422_v34 = vpack.c.bf16 %v557_v32, %v556_v24  ;;  %v1910_v35 = vpop.f32.mrb[28].mxu0  ;;  %1428 = vmatprep.subr.bf16.mxu0 %v1991_v50  ;;  %v585_v24 = vmax.f32 %v489_v21, 0.0  ;;  %v501_v32 = vpop.f32.mrb[25].mxu1 }
 0x116   :  { %v398_v37 = vadd.f32 %v1910_v35, %v2315_v51  ;;  %v389_v38 = vpop.f32.mrb[29].mxu0  ;;  %v2464_v29 = vpack.c.bf16 %v587_v23, %v586_v14  ;;  %v1984_v35 = vld [vmem:[%s3023_s5 + $0x48] sm:$0xff]   ;;  %v502_v36 = vadd.f32 %v2315_v51, %v501_v32 }
 0x117   :  { %829 = vmatmul.mubr.bf16.gmra.mrb[56].mxu1 %v2362_v20  ;;  %v390_v27 = vadd.f32 %v2315_v51, %v389_v38  ;;  %v1911_v41 = vpop.f32.mrb[30].mxu0  ;;  %v590_v38 = vmax.f32 %v510_v57, 0.0 }
 0x118   :  { %838 = vmatprep.mubr.bf16.mxu1 %v1991_v50  ;;  %v562_v44 = vmax.f32 %v398_v37, 0.0  ;;  %v401_v45 = vadd.f32 %v1911_v41, %v2315_v51  ;;  %v392_v46 = vpop.f32.mrb[31].mxu0  ;;  %1429 = vmatpush1.bf16.msra.mxu0 %v1981_v55  ;;  %v1939_v37 = vpop.f32.mrb[26].mxu1 }
 0x119   :  { %v560_v49 = vmax.f32 %v390_v27, 0.0  ;;  %v393_v20 = vadd.f32 %v2315_v51, %v392_v46  ;;  %1430 = vmatprep.subr.bf16.mxu0 %v1991_v50  ;;  %v513_v27 = vadd.f32 %v1939_v37, %v2315_v51  ;;  %v504_v41 = vpop.f32.mrb[27].mxu1 }
 0x11a   :  { %v563_v59 = vmax.f32 %v401_v45, 0.0  ;;  %v505_v43 = vadd.f32 %v2315_v51, %v504_v41 }
 0x11b   :  { %v561_v63 = vmax.f32 %v393_v20, 0.0  ;;  %v591_v45 = vmax.f32 %v513_v27, 0.0 }
 0x11c   :  { %v2442_v1 = vpack.c.bf16 %v563_v59, %v562_v44  ;;  %1431 = vmatpush1.bf16.msra.mxu0 %v1982_v10  ;;  %v1942_v44 = vpop.f32.mrb[28].mxu1  ;;  %v589_v46 = vmax.f32 %v505_v43, 0.0 }
 0x11d   :  { %v2444_v3 = vpack.c.bf16 %v561_v63, %v560_v49  ;;  %1432 = vmatprep.subr.bf16.mxu0 %v1991_v50  ;;  %v2482_v47 = vpack.c.bf16 %v591_v45, %v590_v38  ;;  %v526_v48 = vadd.f32 %v1942_v44, %v2315_v51  ;;  %v517_v20 = vpop.f32.mrb[29].mxu1 }
 0x11e   :  { %v518_v53 = vadd.f32 %v2315_v51, %v517_v20  ;;  %v1943_v54 = vpop.f32.mrb[30].mxu1 }
 0x11f   :  { %839 = vmatmul.mubr.bf16.gmra.mrb[60].mxu1 %v2360_v18  ;;  %v584_v18 = vmax.f32 %v486_v11, 0.0  ;;  %v594_v55 = vmax.f32 %v526_v48, 0.0  ;;  %v529_v59 = vadd.f32 %v1943_v54, %v2315_v51  ;;  %v520_v60 = vpop.f32.mrb[31].mxu1 }
 0x120   :  { %848 = vmatprep.mubr.bf16.mxu1 %v1991_v50  ;;  %1433 = vmatpush1.bf16.msra.mxu0 %v1983_v19  ;;  %v521_v62 = vadd.f32 %v2315_v51, %v520_v60  ;;  %v1989_v51 = vld [vmem:[%s3023_s5 + $0x70] sm:$0xff]  }
 0x121   :  { %v2467_v30 = vpack.c.bf16 %v585_v24, %v584_v18  ;;  %1434 = vmatprep.subr.bf16.mxu0 %v1991_v50  ;;  %v595_v63 = vmax.f32 %v529_v59, 0.0 }
 0x122   :  { %v593_v0 = vmax.f32 %v521_v62, 0.0 }
 0x123   :  { %v2500_v2 = vpack.c.bf16 %v595_v63, %v594_v55 }
 0x124   :  { %1435 = vmatpush1.bf16.msra.mxu0 %v1984_v35 }
 0x125   :  { %1436 = vmatprep.subr.bf16.mxu0 %v1991_v50 }
 0x127   :  { %849 = vmatmul.mubr.bf16.gmra.mrb[64].mxu1 %v2380_v40  ;;  %v588_v40 = vmax.f32 %v502_v36, 0.0 }
 0x128   :  { %858 = vmatprep.mubr.bf16.mxu1 %v1991_v50  ;;  %1437 = vmatpush1.bf16.msra.mxu0 %v1985_v42 }
 0x129   :  { %v2485_v49 = vpack.c.bf16 %v589_v46, %v588_v40  ;;  %1438 = vmatprep.subr.bf16.mxu0 %v1991_v50 }
 0x12c   :  { %1439 = vmatpush1.bf16.msra.mxu0 %v1986_v52 }
 0x12d   :  { %1440 = vmatprep.subr.bf16.mxu0 %v1991_v50 }
 0x12f   :  { %859 = vmatmul.mubr.bf16.gmra.mrb[68].mxu1 %v2377_v39  ;;  %v592_v39 = vmax.f32 %v518_v53, 0.0 }
 0x130   :  { %868 = vmatprep.mubr.bf16.mxu1 %v1991_v50  ;;  %1441 = vmatpush1.bf16.msra.mxu0 %v1987_v61 }
 0x131   :  { %v2502_v5 = vpack.c.bf16 %v593_v0, %v592_v39  ;;  %1442 = vmatprep.subr.bf16.mxu0 %v1991_v50 }
 0x134   :  { %1443 = vmatpush1.bf16.msra.mxu0 %v1988_v9 }
 0x135   :  { %1444 = vmatprep.subr.bf16.mxu0 %v1991_v50 }
 0x137   :  { %869 = vmatmul.mubr.bf16.gmra.mrb[72].mxu1 %v2400_v8  ;;  %v1990_v8 = vld [vmem:[%s3023_s5 + $0x78] sm:$0xff]  }
 0x138   :  { %878 = vmatprep.mubr.bf16.mxu1 %v1991_v50  ;;  %1445 = vmatpush1.bf16.msra.mxu0 %v1989_v51 }
 0x139   :  { %1446 = vmatprep.subr.bf16.mxu0 %v1991_v50 }
 0x13c   :  { %1447 = vmatpush1.bf16.msra.mxu0 %v1990_v8 }
 0x13f   :  { %879 = vmatmul.mubr.bf16.gmra.mrb[76].mxu1 %v2398_v6 }
 0x140   :  { %888 = vmatprep.mubr.bf16.mxu1 %v1991_v50 }
 0x147   :  { %889 = vmatmul.mubr.bf16.gmra.mrb[80].mxu1 %v2422_v34 }
 0x148   :  { %898 = vmatprep.mubr.bf16.mxu1 %v1991_v50 }
 0x14f   :  { %899 = vmatmul.mubr.bf16.gmra.mrb[84].mxu1 %v2420_v33 }
 0x150   :  { %908 = vmatprep.mubr.bf16.mxu1 %v1991_v50 }
 0x157   :  { %909 = vmatmul.mubr.bf16.gmra.mrb[88].mxu1 %v2444_v3 }
 0x158   :  { %918 = vmatprep.mubr.bf16.mxu1 %v1991_v50 }
 0x15f   :  { %919 = vmatmul.mubr.bf16.gmra.mrb[92].mxu1 %v2442_v1 }
 0x160   :  { %928 = vmatprep.mubr.bf16.mxu1 %v1991_v50 }
 0x167   :  { %929 = vmatmul.mubr.bf16.gmra.mrb[96].mxu1 %v2334_v28 }
 0x168   :  { %938 = vmatprep.mubr.bf16.mxu1 %v1991_v50 }
 0x16f   :  { %939 = vmatmul.mubr.bf16.gmra.mrb[100].mxu1 %v2330_v26  ;;  %v646_v26 = vlaneseq }
 0x170   :  { %948 = vmatprep.mubr.bf16.mxu1 %v1991_v50 }
 0x171   :  { %v647_v28 = vshrl.u32 %v646_v26, 7 }
 0x177   :  { %949 = vmatmul.mubr.bf16.gmra.mrb[104].mxu1 %v2349_v58  ;;  %v644_v58 = vld [vmem:[%s3024_s4] sm:$0x3] }
 0x178   :  { %958 = vmatprep.mubr.bf16.mxu1 %v1991_v50 }
 0x17f   :  { %959 = vmatmul.mubr.bf16.gmra.mrb[108].mxu1 %v2345_v56  ;;  %v648_v56 = vsub.s32 0, %v647_v28 }
 0x180   :  { %968 = vmatprep.mubr.bf16.mxu1 %v1991_v50 }
 0x187   :  { %969 = vmatmul.mubr.bf16.gmra.mrb[112].mxu1 %v2369_v31  ;;  %v2552_v31 = vrot.slane %v644_v58, %v648_v56 }
 0x188   :  { %978 = vmatprep.mubr.bf16.mxu1 %v1991_v50 }
 0x18f   :  { %979 = vmatmul.mubr.bf16.gmra.mrb[116].mxu1 %v2365_v25  ;;  %v652_v25 = vsub.s32 1, %v647_v28 }
 0x190   :  { %988 = vmatprep.mubr.bf16.mxu1 %v1991_v50 }
 0x191   :  { %v2554_v6 = vrot.slane %v644_v58, %v652_v25 }
 0x197   :  { %989 = vmatmul.mubr.bf16.gmra.mrb[120].mxu1 %v2408_v16 }
 0x198   :  { %998 = vmatprep.mubr.bf16.mxu1 %v1991_v50 }
 0x19f   :  { %999 = vmatmul.mubr.bf16.gmra.mrb[124].mxu1 %v2403_v13 }
 0x1a0   :  { %1008 = vmatprep.mubr.bf16.mxu1 %v1991_v50 }
 0x1a7   :  { %1009 = vmatmul.mubr.bf16.gmra.mrb[128].mxu1 %v2449_v7 }
 0x1a8   :  { %1018 = vmatprep.mubr.bf16.mxu1 %v1991_v50 }
 0x1af   :  { %1019 = vmatmul.mubr.bf16.gmra.mrb[132].mxu1 %v2446_v4 }
 0x1b0   :  { %1028 = vmatprep.mubr.bf16.mxu1 %v1991_v50 }
 0x1b7   :  { %1029 = vmatmul.mubr.bf16.gmra.mrb[136].mxu1 %v2467_v30 }
 0x1b8   :  { %1038 = vmatprep.mubr.bf16.mxu1 %v1991_v50 }
 0x1ba   :  { %v770_v13 = vpop.f32.mrb[32].mxu1 }
 0x1bb   :  { %v771_v16 = vadd.f32 %v770_v13, %v2552_v31  ;;  %v772_v33 = vpop.f32.mrb[33].mxu1 }
 0x1bc   :  { %v773_v34 = vadd.f32 %v772_v33, %v2554_v6  ;;  %v774_v1 = vpop.f32.mrb[34].mxu1 }
 0x1bd   :  { %v775_v3 = vadd.f32 %v774_v1, %v2552_v31  ;;  %v776_v4 = vpop.f32.mrb[35].mxu1  ;;  %v1089_v10 = vmax.f32 %v771_v16, 0.0 }
 0x1be   :  { %v777_v7 = vadd.f32 %v776_v4, %v2554_v6  ;;  %v1090_v12 = vmax.f32 %v773_v34, 0.0 }
 0x1bf   :  { %v1091_v11 = vmax.f32 %v775_v3, 0.0  ;;  %1039 = vmatmul.mubr.bf16.gmra.mrb[140].mxu1 %v2464_v29 }
 0x1c0   :  { %v1092_v14 = vmax.f32 %v777_v7, 0.0  ;;  %1048 = vmatprep.mubr.bf16.mxu1 %v1991_v50 }
 0x1c1   :  { %v1217_v15 = vpack.c.bf16 %v1091_v11, %v1089_v10 }
 0x1c2   :  { %v1218_v17 = vpack.c.bf16 %v1092_v14, %v1090_v12  ;;  %v780_v19 = vpop.f32.mrb[36].mxu1 }
 0x1c3   :  { %v781_v18 = vadd.f32 %v780_v19, %v2552_v31  ;;  %v782_v21 = vpop.f32.mrb[37].mxu1 }
 0x1c4   :  { %v783_v22 = vadd.f32 %v782_v21, %v2554_v6  ;;  %v784_v23 = vpop.f32.mrb[38].mxu1  ;;  %1448 = vmatprep.mubr.bf16.mxu0 %v1218_v17 }
 0x1c5   :  { %v785_v24 = vadd.f32 %v784_v23, %v2552_v31  ;;  %v786_v57 = vpop.f32.mrb[39].mxu1  ;;  %1449 = vmatmul.mubr.bf16.vlgmr.msra.gmra.mrb[32].mxu0 %v1217_v15  ;;  %v1093_v30 = vmax.f32 %v781_v18, 0.0 }
 0x1c6   :  { %v787_v29 = vadd.f32 %v786_v57, %v2554_v6  ;;  %v1094_v35 = vmax.f32 %v783_v22, 0.0 }
 0x1c7   :  { %v1095_v32 = vmax.f32 %v785_v24, 0.0  ;;  %1049 = vmatmul.mubr.bf16.gmra.mrb[144].mxu1 %v2485_v49 }
 0x1c8   :  { %v1096_v36 = vmax.f32 %v787_v29, 0.0  ;;  %1058 = vmatprep.mubr.bf16.mxu1 %v1991_v50 }
 0x1c9   :  { %v1219_v37 = vpack.c.bf16 %v1095_v32, %v1093_v30 }
 0x1ca   :  { %v1220_v38 = vpack.c.bf16 %v1096_v36, %v1094_v35  ;;  %v790_v27 = vpop.f32.mrb[40].mxu1 }
 0x1cb   :  { %v791_v41 = vadd.f32 %v790_v27, %v2552_v31  ;;  %v792_v42 = vpop.f32.mrb[41].mxu1 }
 0x1cc   :  { %v793_v40 = vadd.f32 %v792_v42, %v2554_v6  ;;  %v794_v43 = vpop.f32.mrb[42].mxu1  ;;  %1456 = vmatprep.mubr.bf16.mxu0 %v1220_v38 }
 0x1cd   :  { %v795_v44 = vadd.f32 %v794_v43, %v2552_v31  ;;  %v796_v45 = vpop.f32.mrb[43].mxu1  ;;  %1457 = vmatmul.mubr.bf16.gmra.mrb[36].mxu0 %v1219_v37  ;;  %v1097_v48 = vmax.f32 %v791_v41, 0.0 }
 0x1ce   :  { %v797_v46 = vadd.f32 %v796_v45, %v2554_v6  ;;  %v1098_v20 = vmax.f32 %v793_v40, 0.0 }
 0x1cf   :  { %v1099_v49 = vmax.f32 %v795_v44, 0.0  ;;  %1059 = vmatmul.mubr.bf16.gmra.mrb[148].mxu1 %v2482_v47 }
 0x1d0   :  { %v1100_v52 = vmax.f32 %v797_v46, 0.0  ;;  %1068 = vmatprep.mubr.bf16.mxu1 %v1991_v50 }
 0x1d1   :  { %v1221_v53 = vpack.c.bf16 %v1099_v49, %v1097_v48 }
 0x1d2   :  { %v1222_v54 = vpack.c.bf16 %v1100_v52, %v1098_v20  ;;  %v800_v55 = vpop.f32.mrb[44].mxu1 }
 0x1d3   :  { %v801_v59 = vadd.f32 %v800_v55, %v2552_v31  ;;  %v802_v60 = vpop.f32.mrb[45].mxu1 }
 0x1d4   :  { %v803_v61 = vadd.f32 %v802_v60, %v2554_v6  ;;  %v804_v39 = vpop.f32.mrb[46].mxu1  ;;  %1464 = vmatprep.mubr.bf16.mxu0 %v1222_v54 }
 0x1d5   :  { %v805_v62 = vadd.f32 %v804_v39, %v2552_v31  ;;  %v806_v63 = vpop.f32.mrb[47].mxu1  ;;  %1465 = vmatmul.mubr.bf16.gmra.mrb[40].mxu0 %v1221_v53  ;;  %v1101_v0 = vmax.f32 %v801_v59, 0.0 }
 0x1d6   :  { %v807_v47 = vadd.f32 %v806_v63, %v2554_v6  ;;  %v1102_v51 = vmax.f32 %v803_v61, 0.0 }
 0x1d7   :  { %v1103_v9 = vmax.f32 %v805_v62, 0.0  ;;  %1069 = vmatmul.mubr.bf16.gmra.mrb[152].mxu1 %v2502_v5 }
 0x1d8   :  { %v1104_v8 = vmax.f32 %v807_v47, 0.0  ;;  %1078 = vmatprep.mubr.bf16.mxu1 %v1991_v50 }
 0x1d9   :  { %v1223_v26 = vpack.c.bf16 %v1103_v9, %v1101_v0 }
 0x1da   :  { %v1224_v28 = vpack.c.bf16 %v1104_v8, %v1102_v51  ;;  %v810_v56 = vpop.f32.mrb[48].mxu1 }
 0x1db   :  { %v811_v58 = vadd.f32 %v810_v56, %v2552_v31  ;;  %v812_v25 = vpop.f32.mrb[49].mxu1 }
 0x1dc   :  { %v813_v13 = vadd.f32 %v812_v25, %v2554_v6  ;;  %v814_v16 = vpop.f32.mrb[50].mxu1  ;;  %1472 = vmatprep.mubr.bf16.mxu0 %v1224_v28 }
 0x1dd   :  { %v815_v33 = vadd.f32 %v814_v16, %v2552_v31  ;;  %v816_v34 = vpop.f32.mrb[51].mxu1  ;;  %1473 = vmatmul.mubr.bf16.gmra.mrb[44].mxu0 %v1223_v26  ;;  %v1105_v1 = vmax.f32 %v811_v58, 0.0 }
 0x1de   :  { %v817_v5 = vadd.f32 %v816_v34, %v2554_v6  ;;  %v1106_v50 = vmax.f32 %v813_v13, 0.0 }
 0x1df   :  { %v1107_v3 = vmax.f32 %v815_v33, 0.0  ;;  %1079 = vmatmul.mubr.bf16.gmra.mrb[156].mxu1 %v2500_v2 }
 0x1e0   :  { %v1108_v4 = vmax.f32 %v817_v5, 0.0 }
 0x1e1   :  { %v1225_v7 = vpack.c.bf16 %v1107_v3, %v1105_v1 }
 0x1e2   :  { %v1226_v10 = vpack.c.bf16 %v1108_v4, %v1106_v50  ;;  %v820_v11 = vpop.f32.mrb[52].mxu1 }
 0x1e3   :  { %v821_v12 = vadd.f32 %v820_v11, %v2552_v31  ;;  %v822_v14 = vpop.f32.mrb[53].mxu1 }
 0x1e4   :  { %v823_v15 = vadd.f32 %v822_v14, %v2554_v6  ;;  %v824_v17 = vpop.f32.mrb[54].mxu1  ;;  %1480 = vmatprep.mubr.bf16.mxu0 %v1226_v10 }
 0x1e5   :  { %v825_v19 = vadd.f32 %v824_v17, %v2552_v31  ;;  %v826_v18 = vpop.f32.mrb[55].mxu1  ;;  %1481 = vmatmul.mubr.bf16.gmra.mrb[48].mxu0 %v1225_v7  ;;  %v1109_v22 = vmax.f32 %v821_v12, 0.0 }
 0x1e6   :  { %v827_v21 = vadd.f32 %v826_v18, %v2554_v6  ;;  %v1110_v23 = vmax.f32 %v823_v15, 0.0 }
 0x1e7   :  { %v1111_v2 = vmax.f32 %v825_v19, 0.0 }
 0x1e8   :  { %v1112_v24 = vmax.f32 %v827_v21, 0.0 }
 0x1e9   :  { %v1227_v57 = vpack.c.bf16 %v1111_v2, %v1109_v22 }
 0x1ea   :  { %v1228_v29 = vpack.c.bf16 %v1112_v24, %v1110_v23  ;;  %v830_v30 = vpop.f32.mrb[56].mxu1 }
 0x1eb   :  { %v831_v32 = vadd.f32 %v830_v30, %v2552_v31  ;;  %v832_v35 = vpop.f32.mrb[57].mxu1 }
 0x1ec   :  { %v833_v36 = vadd.f32 %v832_v35, %v2554_v6  ;;  %v834_v37 = vpop.f32.mrb[58].mxu1  ;;  %1488 = vmatprep.mubr.bf16.mxu0 %v1228_v29 }
 0x1ed   :  { %v835_v38 = vadd.f32 %v834_v37, %v2552_v31  ;;  %v836_v27 = vpop.f32.mrb[59].mxu1  ;;  %1489 = vmatmul.mubr.bf16.gmra.mrb[52].mxu0 %v1227_v57  ;;  %v1113_v42 = vmax.f32 %v831_v32, 0.0 }
 0x1ee   :  { %v837_v41 = vadd.f32 %v836_v27, %v2554_v6  ;;  %v1114_v43 = vmax.f32 %v833_v36, 0.0 }
 0x1ef   :  { %v1115_v40 = vmax.f32 %v835_v38, 0.0 }
 0x1f0   :  { %v1116_v44 = vmax.f32 %v837_v41, 0.0 }
 0x1f1   :  { %v1229_v45 = vpack.c.bf16 %v1115_v40, %v1113_v42 }
 0x1f2   :  { %v1230_v46 = vpack.c.bf16 %v1116_v44, %v1114_v43  ;;  %v840_v48 = vpop.f32.mrb[60].mxu1 }
 0x1f3   :  { %v841_v49 = vadd.f32 %v840_v48, %v2552_v31  ;;  %v842_v20 = vpop.f32.mrb[61].mxu1 }
 0x1f4   :  { %v843_v52 = vadd.f32 %v842_v20, %v2554_v6  ;;  %v844_v53 = vpop.f32.mrb[62].mxu1  ;;  %1496 = vmatprep.mubr.bf16.mxu0 %v1230_v46 }
 0x1f5   :  { %v845_v54 = vadd.f32 %v844_v53, %v2552_v31  ;;  %v846_v55 = vpop.f32.mrb[63].mxu1  ;;  %1497 = vmatmul.mubr.bf16.gmra.mrb[56].mxu0 %v1229_v45  ;;  %v1117_v60 = vmax.f32 %v841_v49, 0.0 }
 0x1f6   :  { %v847_v59 = vadd.f32 %v846_v55, %v2554_v6  ;;  %v1118_v39 = vmax.f32 %v843_v52, 0.0 }
 0x1f7   :  { %v1119_v61 = vmax.f32 %v845_v54, 0.0 }
 0x1f8   :  { %v1120_v62 = vmax.f32 %v847_v59, 0.0 }
 0x1f9   :  { %v1231_v63 = vpack.c.bf16 %v1119_v61, %v1117_v60 }
 0x1fa   :  { %v1232_v47 = vpack.c.bf16 %v1120_v62, %v1118_v39  ;;  %v850_v0 = vpop.f32.mrb[64].mxu1 }
 0x1fb   :  { %v851_v9 = vadd.f32 %v850_v0, %v2552_v31  ;;  %v852_v51 = vpop.f32.mrb[65].mxu1 }
 0x1fc   :  { %v853_v8 = vadd.f32 %v852_v51, %v2554_v6  ;;  %v854_v26 = vpop.f32.mrb[66].mxu1  ;;  %1504 = vmatprep.mubr.bf16.mxu0 %v1232_v47 }
 0x1fd   :  { %v855_v28 = vadd.f32 %v854_v26, %v2552_v31  ;;  %v856_v56 = vpop.f32.mrb[67].mxu1  ;;  %1505 = vmatmul.mubr.bf16.gmra.mrb[60].mxu0 %v1231_v63  ;;  %v1121_v25 = vmax.f32 %v851_v9, 0.0 }
 0x1fe   :  { %v857_v58 = vadd.f32 %v856_v56, %v2554_v6  ;;  %v1122_v16 = vmax.f32 %v853_v8, 0.0 }
 0x1ff   :  { %v1123_v13 = vmax.f32 %v855_v28, 0.0 }
 0x200   :  { %v1124_v33 = vmax.f32 %v857_v58, 0.0 }
 0x201   :  { %v1233_v34 = vpack.c.bf16 %v1123_v13, %v1121_v25 }
 0x202   :  { %v1234_v5 = vpack.c.bf16 %v1124_v33, %v1122_v16  ;;  %v860_v1 = vpop.f32.mrb[68].mxu1 }
 0x203   :  { %v861_v3 = vadd.f32 %v860_v1, %v2552_v31  ;;  %v862_v50 = vpop.f32.mrb[69].mxu1 }
 0x204   :  { %v863_v4 = vadd.f32 %v862_v50, %v2554_v6  ;;  %v864_v7 = vpop.f32.mrb[70].mxu1  ;;  %1512 = vmatprep.mubr.bf16.mxu0 %v1234_v5 }
 0x205   :  { %v865_v10 = vadd.f32 %v864_v7, %v2552_v31  ;;  %v866_v11 = vpop.f32.mrb[71].mxu1  ;;  %1513 = vmatmul.mubr.bf16.gmra.mrb[64].mxu0 %v1233_v34  ;;  %v1125_v14 = vmax.f32 %v861_v3, 0.0 }
 0x206   :  { %v867_v12 = vadd.f32 %v866_v11, %v2554_v6  ;;  %v1126_v17 = vmax.f32 %v863_v4, 0.0 }
 0x207   :  { %v1127_v15 = vmax.f32 %v865_v10, 0.0 }
 0x208   :  { %v1128_v19 = vmax.f32 %v867_v12, 0.0 }
 0x209   :  { %v1235_v18 = vpack.c.bf16 %v1127_v15, %v1125_v14 }
 0x20a   :  { %v1236_v21 = vpack.c.bf16 %v1128_v19, %v1126_v17  ;;  %v870_v22 = vpop.f32.mrb[72].mxu1 }
 0x20b   :  { %v871_v2 = vadd.f32 %v870_v22, %v2552_v31  ;;  %v872_v23 = vpop.f32.mrb[73].mxu1 }
 0x20c   :  { %v873_v24 = vadd.f32 %v872_v23, %v2554_v6  ;;  %v874_v57 = vpop.f32.mrb[74].mxu1  ;;  %1520 = vmatprep.mubr.bf16.mxu0 %v1236_v21 }
 0x20d   :  { %v875_v29 = vadd.f32 %v874_v57, %v2552_v31  ;;  %v876_v30 = vpop.f32.mrb[75].mxu1  ;;  %1521 = vmatmul.mubr.bf16.gmra.mrb[68].mxu0 %v1235_v18  ;;  %v1129_v35 = vmax.f32 %v871_v2, 0.0 }
 0x20e   :  { %v877_v32 = vadd.f32 %v876_v30, %v2554_v6  ;;  %v1130_v37 = vmax.f32 %v873_v24, 0.0 }
 0x20f   :  { %v1131_v36 = vmax.f32 %v875_v29, 0.0 }
 0x210   :  { %v1132_v38 = vmax.f32 %v877_v32, 0.0 }
 0x211   :  { %v1237_v27 = vpack.c.bf16 %v1131_v36, %v1129_v35 }
 0x212   :  { %v1238_v41 = vpack.c.bf16 %v1132_v38, %v1130_v37  ;;  %v880_v42 = vpop.f32.mrb[76].mxu1 }
 0x213   :  { %v881_v40 = vadd.f32 %v880_v42, %v2552_v31  ;;  %v882_v43 = vpop.f32.mrb[77].mxu1 }
 0x214   :  { %v883_v44 = vadd.f32 %v882_v43, %v2554_v6  ;;  %v884_v45 = vpop.f32.mrb[78].mxu1  ;;  %1528 = vmatprep.mubr.bf16.mxu0 %v1238_v41 }
 0x215   :  { %v885_v46 = vadd.f32 %v884_v45, %v2552_v31  ;;  %v886_v48 = vpop.f32.mrb[79].mxu1  ;;  %1529 = vmatmul.mubr.bf16.gmra.mrb[72].mxu0 %v1237_v27  ;;  %v1133_v20 = vmax.f32 %v881_v40, 0.0 }
 0x216   :  { %v887_v49 = vadd.f32 %v886_v48, %v2554_v6  ;;  %v1134_v53 = vmax.f32 %v883_v44, 0.0 }
 0x217   :  { %v1135_v52 = vmax.f32 %v885_v46, 0.0 }
 0x218   :  { %v1136_v54 = vmax.f32 %v887_v49, 0.0 }
 0x219   :  { %v1239_v55 = vpack.c.bf16 %v1135_v52, %v1133_v20 }
 0x21a   :  { %v1240_v59 = vpack.c.bf16 %v1136_v54, %v1134_v53  ;;  %v890_v60 = vpop.f32.mrb[80].mxu1 }
 0x21b   :  { %v891_v61 = vadd.f32 %v890_v60, %v2552_v31  ;;  %v892_v39 = vpop.f32.mrb[81].mxu1 }
 0x21c   :  { %v893_v62 = vadd.f32 %v892_v39, %v2554_v6  ;;  %v894_v63 = vpop.f32.mrb[82].mxu1  ;;  %1536 = vmatprep.mubr.bf16.mxu0 %v1240_v59 }
 0x21d   :  { %v895_v47 = vadd.f32 %v894_v63, %v2552_v31  ;;  %v896_v0 = vpop.f32.mrb[83].mxu1  ;;  %1537 = vmatmul.mubr.bf16.gmra.mrb[76].mxu0 %v1239_v55  ;;  %v1137_v51 = vmax.f32 %v891_v61, 0.0 }
 0x21e   :  { %v897_v9 = vadd.f32 %v896_v0, %v2554_v6  ;;  %v1138_v26 = vmax.f32 %v893_v62, 0.0 }
 0x21f   :  { %v1139_v8 = vmax.f32 %v895_v47, 0.0 }
 0x220   :  { %v1140_v28 = vmax.f32 %v897_v9, 0.0 }
 0x221   :  { %v1241_v56 = vpack.c.bf16 %v1139_v8, %v1137_v51 }
 0x222   :  { %v1242_v58 = vpack.c.bf16 %v1140_v28, %v1138_v26  ;;  %v900_v25 = vpop.f32.mrb[84].mxu1 }
 0x223   :  { %v901_v13 = vadd.f32 %v900_v25, %v2552_v31  ;;  %v902_v16 = vpop.f32.mrb[85].mxu1 }
 0x224   :  { %v903_v33 = vadd.f32 %v902_v16, %v2554_v6  ;;  %v904_v34 = vpop.f32.mrb[86].mxu1  ;;  %1544 = vmatprep.mubr.bf16.mxu0 %v1242_v58 }
 0x225   :  { %v905_v5 = vadd.f32 %v904_v34, %v2552_v31  ;;  %v906_v1 = vpop.f32.mrb[87].mxu1  ;;  %1545 = vmatmul.mubr.bf16.gmra.mrb[80].mxu0 %v1241_v56  ;;  %v1141_v50 = vmax.f32 %v901_v13, 0.0 }
 0x226   :  { %v907_v3 = vadd.f32 %v906_v1, %v2554_v6  ;;  %v1142_v7 = vmax.f32 %v903_v33, 0.0 }
 0x227   :  { %v1143_v4 = vmax.f32 %v905_v5, 0.0 }
 0x228   :  { %v1144_v10 = vmax.f32 %v907_v3, 0.0 }
 0x229   :  { %v1243_v11 = vpack.c.bf16 %v1143_v4, %v1141_v50 }
 0x22a   :  { %v1244_v12 = vpack.c.bf16 %v1144_v10, %v1142_v7  ;;  %v910_v14 = vpop.f32.mrb[88].mxu1 }
 0x22b   :  { %v911_v15 = vadd.f32 %v910_v14, %v2552_v31  ;;  %v912_v17 = vpop.f32.mrb[89].mxu1 }
 0x22c   :  { %v913_v19 = vadd.f32 %v912_v17, %v2554_v6  ;;  %v914_v18 = vpop.f32.mrb[90].mxu1  ;;  %1552 = vmatprep.mubr.bf16.mxu0 %v1244_v12 }
 0x22d   :  { %v915_v21 = vadd.f32 %v914_v18, %v2552_v31  ;;  %v916_v22 = vpop.f32.mrb[91].mxu1  ;;  %1553 = vmatmul.mubr.bf16.gmra.mrb[84].mxu0 %v1243_v11  ;;  %v1145_v23 = vmax.f32 %v911_v15, 0.0 }
 0x22e   :  { %v917_v2 = vadd.f32 %v916_v22, %v2554_v6  ;;  %v1146_v57 = vmax.f32 %v913_v19, 0.0 }
 0x22f   :  { %v1147_v24 = vmax.f32 %v915_v21, 0.0 }
 0x230   :  { %v1148_v29 = vmax.f32 %v917_v2, 0.0 }
 0x231   :  { %v1245_v30 = vpack.c.bf16 %v1147_v24, %v1145_v23 }
 0x232   :  { %v1246_v32 = vpack.c.bf16 %v1148_v29, %v1146_v57  ;;  %v920_v35 = vpop.f32.mrb[92].mxu1 }
 0x233   :  { %v921_v36 = vadd.f32 %v920_v35, %v2552_v31  ;;  %v922_v37 = vpop.f32.mrb[93].mxu1 }
 0x234   :  { %v923_v38 = vadd.f32 %v922_v37, %v2554_v6  ;;  %v924_v27 = vpop.f32.mrb[94].mxu1  ;;  %1560 = vmatprep.mubr.bf16.mxu0 %v1246_v32 }
 0x235   :  { %v925_v41 = vadd.f32 %v924_v27, %v2552_v31  ;;  %v926_v42 = vpop.f32.mrb[95].mxu1  ;;  %1561 = vmatmul.mubr.bf16.gmra.mrb[88].mxu0 %v1245_v30  ;;  %v1149_v43 = vmax.f32 %v921_v36, 0.0 }
 0x236   :  { %v927_v40 = vadd.f32 %v926_v42, %v2554_v6  ;;  %v1150_v45 = vmax.f32 %v923_v38, 0.0 }
 0x237   :  { %v1151_v44 = vmax.f32 %v925_v41, 0.0 }
 0x238   :  { %v1152_v46 = vmax.f32 %v927_v40, 0.0 }
 0x239   :  { %v1247_v48 = vpack.c.bf16 %v1151_v44, %v1149_v43 }
 0x23a   :  { %v1248_v49 = vpack.c.bf16 %v1152_v46, %v1150_v45  ;;  %v930_v20 = vpop.f32.mrb[96].mxu1 }
 0x23b   :  { %v931_v52 = vadd.f32 %v930_v20, %v2552_v31  ;;  %v932_v53 = vpop.f32.mrb[97].mxu1 }
 0x23c   :  { %v933_v54 = vadd.f32 %v932_v53, %v2554_v6  ;;  %v934_v55 = vpop.f32.mrb[98].mxu1  ;;  %1568 = vmatprep.mubr.bf16.mxu0 %v1248_v49 }
 0x23d   :  { %v935_v59 = vadd.f32 %v934_v55, %v2552_v31  ;;  %v936_v60 = vpop.f32.mrb[99].mxu1  ;;  %1569 = vmatmul.mubr.bf16.gmra.mrb[92].mxu0 %v1247_v48  ;;  %v1153_v39 = vmax.f32 %v931_v52, 0.0 }
 0x23e   :  { %v937_v61 = vadd.f32 %v936_v60, %v2554_v6  ;;  %v1154_v63 = vmax.f32 %v933_v54, 0.0 }
 0x23f   :  { %v1155_v62 = vmax.f32 %v935_v59, 0.0 }
 0x240   :  { %v1156_v47 = vmax.f32 %v937_v61, 0.0 }
 0x241   :  { %v1249_v0 = vpack.c.bf16 %v1155_v62, %v1153_v39 }
 0x242   :  { %v1250_v9 = vpack.c.bf16 %v1156_v47, %v1154_v63  ;;  %v940_v51 = vpop.f32.mrb[100].mxu1 }
 0x243   :  { %v941_v8 = vadd.f32 %v940_v51, %v2552_v31  ;;  %v942_v26 = vpop.f32.mrb[101].mxu1 }
 0x244   :  { %v943_v28 = vadd.f32 %v942_v26, %v2554_v6  ;;  %v944_v56 = vpop.f32.mrb[102].mxu1  ;;  %1576 = vmatprep.mubr.bf16.mxu0 %v1250_v9 }
 0x245   :  { %v945_v58 = vadd.f32 %v944_v56, %v2552_v31  ;;  %v946_v25 = vpop.f32.mrb[103].mxu1  ;;  %1577 = vmatmul.mubr.bf16.gmra.mrb[96].mxu0 %v1249_v0  ;;  %v1157_v16 = vmax.f32 %v941_v8, 0.0 }
 0x246   :  { %v947_v13 = vadd.f32 %v946_v25, %v2554_v6  ;;  %v1158_v34 = vmax.f32 %v943_v28, 0.0 }
 0x247   :  { %v1159_v33 = vmax.f32 %v945_v58, 0.0 }
 0x248   :  { %v1160_v5 = vmax.f32 %v947_v13, 0.0 }
 0x249   :  { %v1251_v1 = vpack.c.bf16 %v1159_v33, %v1157_v16 }
 0x24a   :  { %v1252_v3 = vpack.c.bf16 %v1160_v5, %v1158_v34  ;;  %v950_v50 = vpop.f32.mrb[104].mxu1 }
 0x24b   :  { %v951_v4 = vadd.f32 %v950_v50, %v2552_v31  ;;  %v952_v7 = vpop.f32.mrb[105].mxu1 }
 0x24c   :  { %v953_v10 = vadd.f32 %v952_v7, %v2554_v6  ;;  %v954_v11 = vpop.f32.mrb[106].mxu1  ;;  %1584 = vmatprep.mubr.bf16.mxu0 %v1252_v3 }
 0x24d   :  { %v955_v12 = vadd.f32 %v954_v11, %v2552_v31  ;;  %v956_v14 = vpop.f32.mrb[107].mxu1  ;;  %1585 = vmatmul.mubr.bf16.gmra.mrb[100].mxu0 %v1251_v1  ;;  %v1161_v17 = vmax.f32 %v951_v4, 0.0 }
 0x24e   :  { %v957_v15 = vadd.f32 %v956_v14, %v2554_v6  ;;  %v1162_v18 = vmax.f32 %v953_v10, 0.0 }
 0x24f   :  { %v1163_v19 = vmax.f32 %v955_v12, 0.0 }
 0x250   :  { %v1164_v21 = vmax.f32 %v957_v15, 0.0 }
 0x251   :  { %v1253_v22 = vpack.c.bf16 %v1163_v19, %v1161_v17 }
 0x252   :  { %v1254_v2 = vpack.c.bf16 %v1164_v21, %v1162_v18  ;;  %v960_v23 = vpop.f32.mrb[108].mxu1 }
 0x253   :  { %v961_v24 = vadd.f32 %v960_v23, %v2552_v31  ;;  %v962_v57 = vpop.f32.mrb[109].mxu1 }
 0x254   :  { %v963_v29 = vadd.f32 %v962_v57, %v2554_v6  ;;  %v964_v30 = vpop.f32.mrb[110].mxu1  ;;  %1592 = vmatprep.mubr.bf16.mxu0 %v1254_v2 }
 0x255   :  { %v965_v32 = vadd.f32 %v964_v30, %v2552_v31  ;;  %v966_v35 = vpop.f32.mrb[111].mxu1  ;;  %1593 = vmatmul.mubr.bf16.gmra.mrb[104].mxu0 %v1253_v22  ;;  %v1165_v37 = vmax.f32 %v961_v24, 0.0 }
 0x256   :  { %v967_v36 = vadd.f32 %v966_v35, %v2554_v6  ;;  %v1166_v27 = vmax.f32 %v963_v29, 0.0 }
 0x257   :  { %v1167_v38 = vmax.f32 %v965_v32, 0.0 }
 0x258   :  { %v1168_v41 = vmax.f32 %v967_v36, 0.0 }
 0x259   :  { %v1255_v42 = vpack.c.bf16 %v1167_v38, %v1165_v37 }
 0x25a   :  { %v1256_v40 = vpack.c.bf16 %v1168_v41, %v1166_v27  ;;  %v970_v43 = vpop.f32.mrb[112].mxu1 }
 0x25b   :  { %v971_v44 = vadd.f32 %v970_v43, %v2552_v31  ;;  %v972_v45 = vpop.f32.mrb[113].mxu1 }
 0x25c   :  { %v973_v46 = vadd.f32 %v972_v45, %v2554_v6  ;;  %v974_v48 = vpop.f32.mrb[114].mxu1  ;;  %1600 = vmatprep.mubr.bf16.mxu0 %v1256_v40 }
 0x25d   :  { %v975_v49 = vadd.f32 %v974_v48, %v2552_v31  ;;  %v976_v20 = vpop.f32.mrb[115].mxu1  ;;  %1601 = vmatmul.mubr.bf16.gmra.mrb[108].mxu0 %v1255_v42  ;;  %v1169_v53 = vmax.f32 %v971_v44, 0.0 }
 0x25e   :  { %v977_v52 = vadd.f32 %v976_v20, %v2554_v6  ;;  %v1170_v55 = vmax.f32 %v973_v46, 0.0 }
 0x25f   :  { %v1171_v54 = vmax.f32 %v975_v49, 0.0 }
 0x260   :  { %v1172_v59 = vmax.f32 %v977_v52, 0.0 }
 0x261   :  { %v1257_v60 = vpack.c.bf16 %v1171_v54, %v1169_v53 }
 0x262   :  { %v1258_v61 = vpack.c.bf16 %v1172_v59, %v1170_v55  ;;  %v980_v39 = vpop.f32.mrb[116].mxu1 }
 0x263   :  { %v981_v62 = vadd.f32 %v980_v39, %v2552_v31  ;;  %v982_v63 = vpop.f32.mrb[117].mxu1 }
 0x264   :  { %v983_v47 = vadd.f32 %v982_v63, %v2554_v6  ;;  %v984_v0 = vpop.f32.mrb[118].mxu1  ;;  %1608 = vmatprep.mubr.bf16.mxu0 %v1258_v61 }
 0x265   :  { %v985_v9 = vadd.f32 %v984_v0, %v2552_v31  ;;  %v986_v51 = vpop.f32.mrb[119].mxu1  ;;  %1609 = vmatmul.mubr.bf16.gmra.mrb[112].mxu0 %v1257_v60  ;;  %v1173_v26 = vmax.f32 %v981_v62, 0.0 }
 0x266   :  { %v987_v8 = vadd.f32 %v986_v51, %v2554_v6  ;;  %v1174_v56 = vmax.f32 %v983_v47, 0.0 }
 0x267   :  { %v1175_v28 = vmax.f32 %v985_v9, 0.0 }
 0x268   :  { %v1176_v58 = vmax.f32 %v987_v8, 0.0 }
 0x269   :  { %v1259_v25 = vpack.c.bf16 %v1175_v28, %v1173_v26 }
 0x26a   :  { %v1260_v13 = vpack.c.bf16 %v1176_v58, %v1174_v56  ;;  %v990_v16 = vpop.f32.mrb[120].mxu1 }
 0x26b   :  { %v991_v33 = vadd.f32 %v990_v16, %v2552_v31  ;;  %v992_v34 = vpop.f32.mrb[121].mxu1 }
 0x26c   :  { %v993_v5 = vadd.f32 %v992_v34, %v2554_v6  ;;  %v994_v1 = vpop.f32.mrb[122].mxu1  ;;  %1616 = vmatprep.mubr.bf16.mxu0 %v1260_v13 }
 0x26d   :  { %v995_v3 = vadd.f32 %v994_v1, %v2552_v31  ;;  %v996_v50 = vpop.f32.mrb[123].mxu1  ;;  %1617 = vmatmul.mubr.bf16.gmra.mrb[116].mxu0 %v1259_v25  ;;  %v1177_v7 = vmax.f32 %v991_v33, 0.0 }
 0x26e   :  { %v997_v4 = vadd.f32 %v996_v50, %v2554_v6  ;;  %v1178_v11 = vmax.f32 %v993_v5, 0.0 }
 0x26f   :  { %v1179_v10 = vmax.f32 %v995_v3, 0.0 }
 0x270   :  { %v1180_v12 = vmax.f32 %v997_v4, 0.0 }
 0x271   :  { %v1261_v14 = vpack.c.bf16 %v1179_v10, %v1177_v7 }
 0x272   :  { %v1262_v15 = vpack.c.bf16 %v1180_v12, %v1178_v11  ;;  %v1000_v17 = vpop.f32.mrb[124].mxu1 }
 0x273   :  { %v1001_v19 = vadd.f32 %v1000_v17, %v2552_v31  ;;  %v1002_v18 = vpop.f32.mrb[125].mxu1 }
 0x274   :  { %v1003_v21 = vadd.f32 %v1002_v18, %v2554_v6  ;;  %v1004_v22 = vpop.f32.mrb[126].mxu1  ;;  %1624 = vmatprep.mubr.bf16.mxu0 %v1262_v15  ;;  %v2681_v18 = vld [vmem:[%s3025_s6] ss:$0 sm:$0xff] }
 0x275   :  { %v1005_v2 = vadd.f32 %v1004_v22, %v2552_v31  ;;  %v1006_v23 = vpop.f32.mrb[127].mxu1  ;;  %1625 = vmatmul.mubr.bf16.gmra.mrb[120].mxu0 %v1261_v14  ;;  %v1181_v57 = vmax.f32 %v1001_v19, 0.0 }
 0x276   :  { %v1007_v24 = vadd.f32 %v1006_v23, %v2554_v6  ;;  %v1182_v30 = vmax.f32 %v1003_v21, 0.0 }
 0x277   :  { %v1183_v29 = vmax.f32 %v1005_v2, 0.0 }
 0x278   :  { %v1184_v32 = vmax.f32 %v1007_v24, 0.0 }
 0x279   :  { %v1263_v35 = vpack.c.bf16 %v1183_v29, %v1181_v57 }
 0x27a   :  { %v1264_v36 = vpack.c.bf16 %v1184_v32, %v1182_v30  ;;  %v1010_v37 = vpop.f32.mrb[128].mxu1 }
 0x27b   :  { %v1011_v38 = vadd.f32 %v1010_v37, %v2552_v31  ;;  %v1012_v27 = vpop.f32.mrb[129].mxu1 }
 0x27c   :  { %v1013_v41 = vadd.f32 %v1012_v27, %v2554_v6  ;;  %v1014_v42 = vpop.f32.mrb[130].mxu1  ;;  %1632 = vmatprep.mubr.bf16.mxu0 %v1264_v36 }
 0x27d   :  { %v1015_v40 = vadd.f32 %v1014_v42, %v2552_v31  ;;  %v1016_v43 = vpop.f32.mrb[131].mxu1  ;;  %1633 = vmatmul.mubr.bf16.gmra.mrb[124].mxu0 %v1263_v35  ;;  %v1185_v45 = vmax.f32 %v1011_v38, 0.0 }
 0x27e   :  { %v1017_v44 = vadd.f32 %v1016_v43, %v2554_v6  ;;  %v1186_v48 = vmax.f32 %v1013_v41, 0.0 }
 0x27f   :  { %v1187_v46 = vmax.f32 %v1015_v40, 0.0 }
 0x280   :  { %v1188_v49 = vmax.f32 %v1017_v44, 0.0 }
 0x281   :  { %v1265_v20 = vpack.c.bf16 %v1187_v46, %v1185_v45 }
 0x282   :  { %v1266_v52 = vpack.c.bf16 %v1188_v49, %v1186_v48  ;;  %v1020_v53 = vpop.f32.mrb[132].mxu1 }
 0x283   :  { %v1021_v54 = vadd.f32 %v1020_v53, %v2552_v31  ;;  %v1022_v55 = vpop.f32.mrb[133].mxu1 }
 0x284   :  { %v1023_v59 = vadd.f32 %v1022_v55, %v2554_v6  ;;  %v1024_v60 = vpop.f32.mrb[134].mxu1  ;;  %1640 = vmatprep.mubr.bf16.mxu0 %v1266_v52 }
 0x285   :  { %v1025_v61 = vadd.f32 %v1024_v60, %v2552_v31  ;;  %v1026_v39 = vpop.f32.mrb[135].mxu1  ;;  %1641 = vmatmul.mubr.bf16.gmra.mrb[128].mxu0 %v1265_v20  ;;  %v1189_v63 = vmax.f32 %v1021_v54, 0.0 }
 0x286   :  { %v1027_v62 = vadd.f32 %v1026_v39, %v2554_v6  ;;  %v1190_v0 = vmax.f32 %v1023_v59, 0.0 }
 0x287   :  { %v1191_v47 = vmax.f32 %v1025_v61, 0.0 }
 0x288   :  { %v1192_v9 = vmax.f32 %v1027_v62, 0.0 }
 0x289   :  { %v1267_v51 = vpack.c.bf16 %v1191_v47, %v1189_v63 }
 0x28a   :  { %v1268_v8 = vpack.c.bf16 %v1192_v9, %v1190_v0  ;;  %v1030_v26 = vpop.f32.mrb[136].mxu1 }
 0x28b   :  { %v1031_v28 = vadd.f32 %v1030_v26, %v2552_v31  ;;  %v1032_v56 = vpop.f32.mrb[137].mxu1 }
 0x28c   :  { %v1033_v58 = vadd.f32 %v1032_v56, %v2554_v6  ;;  %v1034_v25 = vpop.f32.mrb[138].mxu1  ;;  %1648 = vmatprep.mubr.bf16.mxu0 %v1268_v8 }
 0x28d   :  { %v1035_v13 = vadd.f32 %v1034_v25, %v2552_v31  ;;  %v1036_v16 = vpop.f32.mrb[139].mxu1  ;;  %1649 = vmatmul.mubr.bf16.gmra.mrb[132].mxu0 %v1267_v51  ;;  %v1193_v34 = vmax.f32 %v1031_v28, 0.0 }
 0x28e   :  { %v1037_v33 = vadd.f32 %v1036_v16, %v2554_v6  ;;  %v1194_v1 = vmax.f32 %v1033_v58, 0.0 }
 0x28f   :  { %v1195_v5 = vmax.f32 %v1035_v13, 0.0 }
 0x290   :  { %v1196_v3 = vmax.f32 %v1037_v33, 0.0 }
 0x291   :  { %v1269_v50 = vpack.c.bf16 %v1195_v5, %v1193_v34 }
 0x292   :  { %v1270_v4 = vpack.c.bf16 %v1196_v3, %v1194_v1  ;;  %v1040_v7 = vpop.f32.mrb[140].mxu1 }
 0x293   :  { %v1041_v10 = vadd.f32 %v1040_v7, %v2552_v31  ;;  %v1042_v11 = vpop.f32.mrb[141].mxu1 }
 0x294   :  { %v1043_v12 = vadd.f32 %v1042_v11, %v2554_v6  ;;  %v1044_v14 = vpop.f32.mrb[142].mxu1  ;;  %1656 = vmatprep.mubr.bf16.mxu0 %v1270_v4 }
 0x295   :  { %v1045_v15 = vadd.f32 %v1044_v14, %v2552_v31  ;;  %v1046_v17 = vpop.f32.mrb[143].mxu1  ;;  %1657 = vmatmul.mubr.bf16.gmra.mrb[136].mxu0 %v1269_v50  ;;  %v1197_v21 = vmax.f32 %v1041_v10, 0.0 }
 0x296   :  { %v1047_v19 = vadd.f32 %v1046_v17, %v2554_v6  ;;  %v1198_v2 = vmax.f32 %v1043_v12, 0.0 }
 0x297   :  { %v1199_v22 = vmax.f32 %v1045_v15, 0.0 }
 0x298   :  { %v1200_v23 = vmax.f32 %v1047_v19, 0.0  ;;  %v1450_v24 = vpop.f32.mrb[32].mxu0 }
 0x299   :  { %v1271_v57 = vpack.c.bf16 %v1199_v22, %v1197_v21  ;;  %v1451_v29 = vadd.f32 %v2681_v18, %v1450_v24  ;;  %v1452_v30 = vpop.f32.mrb[33].mxu0 }
 0x29a   :  { %v1272_v32 = vpack.c.bf16 %v1200_v23, %v1198_v2  ;;  %v1050_v35 = vpop.f32.mrb[144].mxu1  ;;  %v1453_v36 = vpop.f32.mrb[34].mxu0 }
 0x29b   :  { %1706 = vst.msk [vmem:[%s3026_s7] sm:$0xff] %vm1705_vm1, %v1451_v29  ;;  %v1051_v37 = vadd.f32 %v1050_v35, %v2552_v31  ;;  %v1454_v38 = vadd.f32 %v2681_v18, %v1453_v36  ;;  %v1052_v27 = vpop.f32.mrb[145].mxu1  ;;  %v1455_v41 = vpop.f32.mrb[35].mxu0 }
 0x29c   :  { %v1053_v42 = vadd.f32 %v1052_v27, %v2554_v6  ;;  %v1054_v40 = vpop.f32.mrb[146].mxu1  ;;  %1664 = vmatprep.mubr.bf16.mxu0 %v1272_v32 }
 0x29d   :  { %1707 = vst.msk [vmem:[%s3026_s7 + $0x8] sm:$0xff] %vm1705_vm1, %v1454_v38  ;;  %v1055_v43 = vadd.f32 %v1054_v40, %v2552_v31  ;;  %v1056_v44 = vpop.f32.mrb[147].mxu1  ;;  %1665 = vmatmul.mubr.bf16.gmra.mrb[140].mxu0 %v1271_v57  ;;  %v1201_v46 = vmax.f32 %v1051_v37, 0.0 }
 0x29e   :  { %v1057_v45 = vadd.f32 %v1056_v44, %v2554_v6  ;;  %v1202_v49 = vmax.f32 %v1053_v42, 0.0 }
 0x29f   :  { %v1203_v48 = vmax.f32 %v1055_v43, 0.0 }
 0x2a0   :  { %v1204_v20 = vmax.f32 %v1057_v45, 0.0  ;;  %v1458_v52 = vpop.f32.mrb[36].mxu0 }
 0x2a1   :  { %v1273_v53 = vpack.c.bf16 %v1203_v48, %v1201_v46  ;;  %v1459_v54 = vadd.f32 %v2681_v18, %v1458_v52  ;;  %v1460_v55 = vpop.f32.mrb[37].mxu0 }
 0x2a2   :  { %v1274_v59 = vpack.c.bf16 %v1204_v20, %v1202_v49  ;;  %v1060_v60 = vpop.f32.mrb[148].mxu1  ;;  %v1461_v61 = vpop.f32.mrb[38].mxu0 }
 0x2a3   :  { %1708 = vst.msk [vmem:[%s3026_s7 + $0x10] sm:$0xff] %vm1705_vm1, %v1459_v54  ;;  %v1061_v39 = vadd.f32 %v1060_v60, %v2552_v31  ;;  %v1462_v62 = vadd.f32 %v2681_v18, %v1461_v61  ;;  %v1062_v63 = vpop.f32.mrb[149].mxu1  ;;  %v1463_v47 = vpop.f32.mrb[39].mxu0 }
 0x2a4   :  { %v1063_v0 = vadd.f32 %v1062_v63, %v2554_v6  ;;  %v1064_v9 = vpop.f32.mrb[150].mxu1  ;;  %1672 = vmatprep.mubr.bf16.mxu0 %v1274_v59 }
 0x2a5   :  { %1709 = vst.msk [vmem:[%s3026_s7 + $0x18] sm:$0xff] %vm1705_vm1, %v1462_v62  ;;  %v1065_v51 = vadd.f32 %v1064_v9, %v2552_v31  ;;  %v1066_v8 = vpop.f32.mrb[151].mxu1  ;;  %1673 = vmatmul.mubr.bf16.gmra.mrb[144].mxu0 %v1273_v53  ;;  %v1205_v28 = vmax.f32 %v1061_v39, 0.0 }
 0x2a6   :  { %v1067_v26 = vadd.f32 %v1066_v8, %v2554_v6  ;;  %v1206_v58 = vmax.f32 %v1063_v0, 0.0 }
 0x2a7   :  { %v1207_v56 = vmax.f32 %v1065_v51, 0.0 }
 0x2a8   :  { %v1208_v25 = vmax.f32 %v1067_v26, 0.0  ;;  %v1466_v13 = vpop.f32.mrb[40].mxu0 }
 0x2a9   :  { %v1275_v16 = vpack.c.bf16 %v1207_v56, %v1205_v28  ;;  %v1467_v33 = vadd.f32 %v2681_v18, %v1466_v13  ;;  %v1468_v34 = vpop.f32.mrb[41].mxu0 }
 0x2aa   :  { %v1276_v5 = vpack.c.bf16 %v1208_v25, %v1206_v58  ;;  %v1070_v1 = vpop.f32.mrb[152].mxu1  ;;  %v1469_v3 = vpop.f32.mrb[42].mxu0 }
 0x2ab   :  { %1710 = vst.msk [vmem:[%s3026_s7 + $0x20] sm:$0xff] %vm1705_vm1, %v1467_v33  ;;  %v1071_v50 = vadd.f32 %v1070_v1, %v2552_v31  ;;  %v1470_v4 = vadd.f32 %v2681_v18, %v1469_v3  ;;  %v1072_v7 = vpop.f32.mrb[153].mxu1  ;;  %v1471_v10 = vpop.f32.mrb[43].mxu0 }
 0x2ac   :  { %v1073_v11 = vadd.f32 %v1072_v7, %v2554_v6  ;;  %v1074_v12 = vpop.f32.mrb[154].mxu1  ;;  %1680 = vmatprep.mubr.bf16.mxu0 %v1276_v5 }
 0x2ad   :  { %1711 = vst.msk [vmem:[%s3026_s7 + $0x28] sm:$0xff] %vm1705_vm1, %v1470_v4  ;;  %v1075_v14 = vadd.f32 %v1074_v12, %v2552_v31  ;;  %v1076_v15 = vpop.f32.mrb[155].mxu1  ;;  %1681 = vmatmul.mubr.bf16.gmra.mrb[148].mxu0 %v1275_v16  ;;  %v1209_v19 = vmax.f32 %v1071_v50, 0.0 }
 0x2ae   :  { %v1077_v17 = vadd.f32 %v1076_v15, %v2554_v6  ;;  %v1210_v22 = vmax.f32 %v1073_v11, 0.0 }
 0x2af   :  { %v1211_v21 = vmax.f32 %v1075_v14, 0.0 }
 0x2b0   :  { %v1212_v2 = vmax.f32 %v1077_v17, 0.0  ;;  %v1474_v23 = vpop.f32.mrb[44].mxu0 }
 0x2b1   :  { %v1277_v24 = vpack.c.bf16 %v1211_v21, %v1209_v19  ;;  %v1475_v57 = vadd.f32 %v2681_v18, %v1474_v23  ;;  %v1476_v29 = vpop.f32.mrb[45].mxu0 }
 0x2b2   :  { %v1278_v30 = vpack.c.bf16 %v1212_v2, %v1210_v22  ;;  %v1080_v32 = vpop.f32.mrb[156].mxu1  ;;  %v1477_v35 = vpop.f32.mrb[46].mxu0 }
 0x2b3   :  { %1712 = vst.msk [vmem:[%s3026_s7 + $0x30] sm:$0xff] %vm1705_vm1, %v1475_v57  ;;  %v1081_v36 = vadd.f32 %v1080_v32, %v2552_v31  ;;  %v1478_v37 = vadd.f32 %v2681_v18, %v1477_v35  ;;  %v1082_v38 = vpop.f32.mrb[157].mxu1  ;;  %v1479_v27 = vpop.f32.mrb[47].mxu0 }
 0x2b4   :  { %v1083_v41 = vadd.f32 %v1082_v38, %v2554_v6  ;;  %v1084_v42 = vpop.f32.mrb[158].mxu1  ;;  %1688 = vmatprep.mubr.bf16.mxu0 %v1278_v30 }
 0x2b5   :  { %1713 = vst.msk [vmem:[%s3026_s7 + $0x38] sm:$0xff] %vm1705_vm1, %v1478_v37  ;;  %v1085_v40 = vadd.f32 %v1084_v42, %v2552_v31  ;;  %v1086_v43 = vpop.f32.mrb[159].mxu1  ;;  %1689 = vmatmul.mubr.bf16.gmra.mrb[152].mxu0 %v1277_v24  ;;  %v1213_v45 = vmax.f32 %v1081_v36, 0.0 }
 0x2b6   :  { %v1087_v44 = vadd.f32 %v1086_v43, %v2554_v6  ;;  %v1214_v48 = vmax.f32 %v1083_v41, 0.0 }
 0x2b7   :  { %v1215_v46 = vmax.f32 %v1085_v40, 0.0 }
 0x2b8   :  { %v1216_v49 = vmax.f32 %v1087_v44, 0.0  ;;  %v1482_v20 = vpop.f32.mrb[48].mxu0 }
 0x2b9   :  { %v1279_v52 = vpack.c.bf16 %v1215_v46, %v1213_v45  ;;  %v1483_v53 = vadd.f32 %v2681_v18, %v1482_v20  ;;  %v1484_v54 = vpop.f32.mrb[49].mxu0 }
 0x2ba   :  { %v1280_v55 = vpack.c.bf16 %v1216_v49, %v1214_v48  ;;  %v1485_v59 = vpop.f32.mrb[50].mxu0 }
 0x2bb   :  { %1714 = vst.msk [vmem:[%s3026_s7 + $0x40] sm:$0xff] %vm1705_vm1, %v1483_v53  ;;  %v1486_v31 = vadd.f32 %v2681_v18, %v1485_v59  ;;  %v1487_v60 = vpop.f32.mrb[51].mxu0 }
 0x2bc   :  { %1696 = vmatprep.mubr.bf16.mxu0 %v1280_v55 }
 0x2bd   :  { %1715 = vst.msk [vmem:[%s3026_s7 + $0x48] sm:$0xff] %vm1705_vm1, %v1486_v31  ;;  %1697 = vmatmul.mubr.bf16.gmra.mrb[156].mxu0 %v1279_v52 }
 0x2c0   :  { %v1490_v6 = vpop.f32.mrb[52].mxu0 }
 0x2c1   :  { %v1491_v61 = vadd.f32 %v2681_v18, %v1490_v6  ;;  %v1492_v39 = vpop.f32.mrb[53].mxu0 }
 0x2c2   :  { %v1493_v62 = vpop.f32.mrb[54].mxu0 }
 0x2c3   :  { %1716 = vst.msk [vmem:[%s3026_s7 + $0x50] sm:$0xff] %vm1705_vm1, %v1491_v61  ;;  %v1494_v63 = vadd.f32 %v2681_v18, %v1493_v62  ;;  %v1495_v47 = vpop.f32.mrb[55].mxu0 }
 0x2c5   :  { %1717 = vst.msk [vmem:[%s3026_s7 + $0x58] sm:$0xff] %vm1705_vm1, %v1494_v63 }
 0x2c8   :  { %v1498_v0 = vpop.f32.mrb[56].mxu0 }
 0x2c9   :  { %v1499_v9 = vadd.f32 %v2681_v18, %v1498_v0  ;;  %v1500_v51 = vpop.f32.mrb[57].mxu0 }
 0x2ca   :  { %v1501_v8 = vpop.f32.mrb[58].mxu0 }
 0x2cb   :  { %1718 = vst.msk [vmem:[%s3026_s7 + $0x60] sm:$0xff] %vm1705_vm1, %v1499_v9  ;;  %v1502_v26 = vadd.f32 %v2681_v18, %v1501_v8  ;;  %v1503_v28 = vpop.f32.mrb[59].mxu0 }
 0x2cd   :  { %1719 = vst.msk [vmem:[%s3026_s7 + $0x68] sm:$0xff] %vm1705_vm1, %v1502_v26 }
 0x2d0   :  { %v1506_v56 = vpop.f32.mrb[60].mxu0 }
 0x2d1   :  { %v1507_v58 = vadd.f32 %v2681_v18, %v1506_v56  ;;  %v1508_v25 = vpop.f32.mrb[61].mxu0 }
 0x2d2   :  { %v1509_v13 = vpop.f32.mrb[62].mxu0 }
 0x2d3   :  { %1720 = vst.msk [vmem:[%s3026_s7 + $0x70] sm:$0xff] %vm1705_vm1, %v1507_v58  ;;  %v1510_v16 = vadd.f32 %v2681_v18, %v1509_v13  ;;  %v1511_v33 = vpop.f32.mrb[63].mxu0 }
 0x2d5   :  { %1721 = vst.msk [vmem:[%s3026_s7 + $0x78] sm:$0xff] %vm1705_vm1, %v1510_v16 }
 0x2d8   :  { %v1514_v34 = vpop.f32.mrb[64].mxu0 }
 0x2d9   :  { %v1515_v5 = vadd.f32 %v2681_v18, %v1514_v34  ;;  %v1516_v1 = vpop.f32.mrb[65].mxu0 }
 0x2da   :  { %v1517_v3 = vpop.f32.mrb[66].mxu0 }
 0x2db   :  { %1722 = vst.msk [vmem:[%s3026_s7 + $0x80] sm:$0xff] %vm1705_vm1, %v1515_v5  ;;  %v1518_v50 = vadd.f32 %v2681_v18, %v1517_v3  ;;  %v1519_v4 = vpop.f32.mrb[67].mxu0 }
 0x2dd   :  { %1723 = vst.msk [vmem:[%s3026_s7 + $0x88] sm:$0xff] %vm1705_vm1, %v1518_v50 }
 0x2e0   :  { %v1522_v7 = vpop.f32.mrb[68].mxu0 }
 0x2e1   :  { %v1523_v10 = vadd.f32 %v2681_v18, %v1522_v7  ;;  %v1524_v11 = vpop.f32.mrb[69].mxu0 }
 0x2e2   :  { %v1525_v12 = vpop.f32.mrb[70].mxu0 }
 0x2e3   :  { %1724 = vst.msk [vmem:[%s3026_s7 + $0x90] sm:$0xff] %vm1705_vm1, %v1523_v10  ;;  %v1526_v14 = vadd.f32 %v2681_v18, %v1525_v12  ;;  %v1527_v15 = vpop.f32.mrb[71].mxu0 }
 0x2e5   :  { %1725 = vst.msk [vmem:[%s3026_s7 + $0x98] sm:$0xff] %vm1705_vm1, %v1526_v14 }
 0x2e8   :  { %v1530_v17 = vpop.f32.mrb[72].mxu0 }
 0x2e9   :  { %v1531_v19 = vadd.f32 %v2681_v18, %v1530_v17  ;;  %v1532_v21 = vpop.f32.mrb[73].mxu0 }
 0x2ea   :  { %v1533_v22 = vpop.f32.mrb[74].mxu0 }
 0x2eb   :  { %1726 = vst.msk [vmem:[%s3026_s7 + $0xa0] sm:$0xff] %vm1705_vm1, %v1531_v19  ;;  %v1534_v2 = vadd.f32 %v2681_v18, %v1533_v22  ;;  %v1535_v23 = vpop.f32.mrb[75].mxu0 }
 0x2ed   :  { %1727 = vst.msk [vmem:[%s3026_s7 + $0xa8] sm:$0xff] %vm1705_vm1, %v1534_v2 }
 0x2f0   :  { %v1538_v24 = vpop.f32.mrb[76].mxu0 }
 0x2f1   :  { %v1539_v57 = vadd.f32 %v2681_v18, %v1538_v24  ;;  %v1540_v29 = vpop.f32.mrb[77].mxu0 }
 0x2f2   :  { %v1541_v30 = vpop.f32.mrb[78].mxu0 }
 0x2f3   :  { %1728 = vst.msk [vmem:[%s3026_s7 + $0xb0] sm:$0xff] %vm1705_vm1, %v1539_v57  ;;  %v1542_v32 = vadd.f32 %v2681_v18, %v1541_v30  ;;  %v1543_v35 = vpop.f32.mrb[79].mxu0 }
 0x2f5   :  { %1729 = vst.msk [vmem:[%s3026_s7 + $0xb8] sm:$0xff] %vm1705_vm1, %v1542_v32 }
 0x2f8   :  { %v1546_v36 = vpop.f32.mrb[80].mxu0 }
 0x2f9   :  { %v1547_v37 = vadd.f32 %v2681_v18, %v1546_v36  ;;  %v1548_v38 = vpop.f32.mrb[81].mxu0 }
 0x2fa   :  { %v1549_v27 = vpop.f32.mrb[82].mxu0 }
 0x2fb   :  { %1730 = vst.msk [vmem:[%s3026_s7 + $0xc0] sm:$0xff] %vm1705_vm1, %v1547_v37  ;;  %v1550_v41 = vadd.f32 %v2681_v18, %v1549_v27  ;;  %v1551_v42 = vpop.f32.mrb[83].mxu0 }
 0x2fd   :  { %1731 = vst.msk [vmem:[%s3026_s7 + $0xc8] sm:$0xff] %vm1705_vm1, %v1550_v41 }
 0x300   :  { %v1554_v40 = vpop.f32.mrb[84].mxu0 }
 0x301   :  { %v1555_v43 = vadd.f32 %v2681_v18, %v1554_v40  ;;  %v1556_v44 = vpop.f32.mrb[85].mxu0 }
 0x302   :  { %v1557_v45 = vpop.f32.mrb[86].mxu0 }
 0x303   :  { %1732 = vst.msk [vmem:[%s3026_s7 + $0xd0] sm:$0xff] %vm1705_vm1, %v1555_v43  ;;  %v1558_v46 = vadd.f32 %v2681_v18, %v1557_v45  ;;  %v1559_v48 = vpop.f32.mrb[87].mxu0 }
 0x305   :  { %1733 = vst.msk [vmem:[%s3026_s7 + $0xd8] sm:$0xff] %vm1705_vm1, %v1558_v46 }
 0x308   :  { %v1562_v49 = vpop.f32.mrb[88].mxu0 }
 0x309   :  { %v1563_v20 = vadd.f32 %v2681_v18, %v1562_v49  ;;  %v1564_v52 = vpop.f32.mrb[89].mxu0 }
 0x30a   :  { %v1565_v53 = vpop.f32.mrb[90].mxu0 }
 0x30b   :  { %1734 = vst.msk [vmem:[%s3026_s7 + $0xe0] sm:$0xff] %vm1705_vm1, %v1563_v20  ;;  %v1566_v54 = vadd.f32 %v2681_v18, %v1565_v53  ;;  %v1567_v55 = vpop.f32.mrb[91].mxu0 }
 0x30d   :  { %1735 = vst.msk [vmem:[%s3026_s7 + $0xe8] sm:$0xff] %vm1705_vm1, %v1566_v54 }
 0x310   :  { %v1570_v59 = vpop.f32.mrb[92].mxu0 }
 0x311   :  { %v1571_v31 = vadd.f32 %v2681_v18, %v1570_v59  ;;  %v1572_v60 = vpop.f32.mrb[93].mxu0 }
 0x312   :  { %v1573_v6 = vpop.f32.mrb[94].mxu0 }
 0x313   :  { %1736 = vst.msk [vmem:[%s3026_s7 + $0xf0] sm:$0xff] %vm1705_vm1, %v1571_v31  ;;  %v1574_v61 = vadd.f32 %v2681_v18, %v1573_v6  ;;  %v1575_v39 = vpop.f32.mrb[95].mxu0 }
 0x315   :  { %1737 = vst.msk [vmem:[%s3026_s7 + $0xf8] sm:$0xff] %vm1705_vm1, %v1574_v61 }
 0x318   :  { %v1578_v62 = vpop.f32.mrb[96].mxu0 }
 0x319   :  { %v1579_v63 = vadd.f32 %v2681_v18, %v1578_v62  ;;  %v1580_v47 = vpop.f32.mrb[97].mxu0 }
 0x31a   :  { %v1581_v0 = vpop.f32.mrb[98].mxu0 }
 0x31b   :  { %1738 = vst.msk [vmem:[%s3026_s7 + $0x100] sm:$0xff] %vm1705_vm1, %v1579_v63  ;;  %v1582_v9 = vadd.f32 %v2681_v18, %v1581_v0  ;;  %v1583_v51 = vpop.f32.mrb[99].mxu0 }
 0x31d   :  { %1739 = vst.msk [vmem:[%s3026_s7 + $0x108] sm:$0xff] %vm1705_vm1, %v1582_v9 }
 0x320   :  { %v1586_v8 = vpop.f32.mrb[100].mxu0 }
 0x321   :  { %v1587_v26 = vadd.f32 %v2681_v18, %v1586_v8  ;;  %v1588_v28 = vpop.f32.mrb[101].mxu0 }
 0x322   :  { %v1589_v56 = vpop.f32.mrb[102].mxu0 }
 0x323   :  { %1740 = vst.msk [vmem:[%s3026_s7 + $0x110] sm:$0xff] %vm1705_vm1, %v1587_v26  ;;  %v1590_v58 = vadd.f32 %v2681_v18, %v1589_v56  ;;  %v1591_v25 = vpop.f32.mrb[103].mxu0 }
 0x325   :  { %1741 = vst.msk [vmem:[%s3026_s7 + $0x118] sm:$0xff] %vm1705_vm1, %v1590_v58 }
 0x328   :  { %v1594_v13 = vpop.f32.mrb[104].mxu0 }
 0x329   :  { %v1595_v16 = vadd.f32 %v2681_v18, %v1594_v13  ;;  %v1596_v33 = vpop.f32.mrb[105].mxu0 }
 0x32a   :  { %v1597_v34 = vpop.f32.mrb[106].mxu0 }
 0x32b   :  { %1742 = vst.msk [vmem:[%s3026_s7 + $0x120] sm:$0xff] %vm1705_vm1, %v1595_v16  ;;  %v1598_v5 = vadd.f32 %v2681_v18, %v1597_v34  ;;  %v1599_v1 = vpop.f32.mrb[107].mxu0 }
 0x32d   :  { %1743 = vst.msk [vmem:[%s3026_s7 + $0x128] sm:$0xff] %vm1705_vm1, %v1598_v5 }
 0x330   :  { %v1602_v3 = vpop.f32.mrb[108].mxu0 }
 0x331   :  { %v1603_v50 = vadd.f32 %v2681_v18, %v1602_v3  ;;  %v1604_v4 = vpop.f32.mrb[109].mxu0 }
 0x332   :  { %v1605_v7 = vpop.f32.mrb[110].mxu0 }
 0x333   :  { %1744 = vst.msk [vmem:[%s3026_s7 + $0x130] sm:$0xff] %vm1705_vm1, %v1603_v50  ;;  %v1606_v10 = vadd.f32 %v2681_v18, %v1605_v7  ;;  %v1607_v11 = vpop.f32.mrb[111].mxu0 }
 0x335   :  { %1745 = vst.msk [vmem:[%s3026_s7 + $0x138] sm:$0xff] %vm1705_vm1, %v1606_v10 }
 0x338   :  { %v1610_v12 = vpop.f32.mrb[112].mxu0 }
 0x339   :  { %v1611_v14 = vadd.f32 %v2681_v18, %v1610_v12  ;;  %v1612_v15 = vpop.f32.mrb[113].mxu0 }
 0x33a   :  { %v1613_v17 = vpop.f32.mrb[114].mxu0 }
 0x33b   :  { %1746 = vst.msk [vmem:[%s3026_s7 + $0x140] sm:$0xff] %vm1705_vm1, %v1611_v14  ;;  %v1614_v19 = vadd.f32 %v2681_v18, %v1613_v17  ;;  %v1615_v21 = vpop.f32.mrb[115].mxu0 }
 0x33d   :  { %1747 = vst.msk [vmem:[%s3026_s7 + $0x148] sm:$0xff] %vm1705_vm1, %v1614_v19 }
 0x340   :  { %v1618_v22 = vpop.f32.mrb[116].mxu0 }
 0x341   :  { %v1619_v2 = vadd.f32 %v2681_v18, %v1618_v22  ;;  %v1620_v23 = vpop.f32.mrb[117].mxu0 }
 0x342   :  { %v1621_v24 = vpop.f32.mrb[118].mxu0 }
 0x343   :  { %1748 = vst.msk [vmem:[%s3026_s7 + $0x150] sm:$0xff] %vm1705_vm1, %v1619_v2  ;;  %v1622_v57 = vadd.f32 %v2681_v18, %v1621_v24  ;;  %v1623_v29 = vpop.f32.mrb[119].mxu0 }
 0x345   :  { %1749 = vst.msk [vmem:[%s3026_s7 + $0x158] sm:$0xff] %vm1705_vm1, %v1622_v57 }
 0x348   :  { %v1626_v30 = vpop.f32.mrb[120].mxu0 }
 0x349   :  { %v1627_v32 = vadd.f32 %v2681_v18, %v1626_v30  ;;  %v1628_v35 = vpop.f32.mrb[121].mxu0 }
 0x34a   :  { %v1629_v36 = vpop.f32.mrb[122].mxu0 }
 0x34b   :  { %1750 = vst.msk [vmem:[%s3026_s7 + $0x160] sm:$0xff] %vm1705_vm1, %v1627_v32  ;;  %v1630_v37 = vadd.f32 %v2681_v18, %v1629_v36  ;;  %v1631_v38 = vpop.f32.mrb[123].mxu0 }
 0x34d   :  { %1751 = vst.msk [vmem:[%s3026_s7 + $0x168] sm:$0xff] %vm1705_vm1, %v1630_v37 }
 0x350   :  { %v1634_v27 = vpop.f32.mrb[124].mxu0 }
 0x351   :  { %v1635_v41 = vadd.f32 %v2681_v18, %v1634_v27  ;;  %v1636_v42 = vpop.f32.mrb[125].mxu0 }
 0x352   :  { %v1637_v40 = vpop.f32.mrb[126].mxu0 }
 0x353   :  { %1752 = vst.msk [vmem:[%s3026_s7 + $0x170] sm:$0xff] %vm1705_vm1, %v1635_v41  ;;  %v1638_v43 = vadd.f32 %v2681_v18, %v1637_v40  ;;  %v1639_v44 = vpop.f32.mrb[127].mxu0 }
 0x355   :  { %1753 = vst.msk [vmem:[%s3026_s7 + $0x178] sm:$0xff] %vm1705_vm1, %v1638_v43 }
 0x358   :  { %v1642_v45 = vpop.f32.mrb[128].mxu0 }
 0x359   :  { %v1643_v46 = vadd.f32 %v2681_v18, %v1642_v45  ;;  %v1644_v48 = vpop.f32.mrb[129].mxu0 }
 0x35a   :  { %v1645_v49 = vpop.f32.mrb[130].mxu0 }
 0x35b   :  { %1754 = vst.msk [vmem:[%s3026_s7 + $0x180] sm:$0xff] %vm1705_vm1, %v1643_v46  ;;  %v1646_v20 = vadd.f32 %v2681_v18, %v1645_v49  ;;  %v1647_v52 = vpop.f32.mrb[131].mxu0 }
 0x35d   :  { %1755 = vst.msk [vmem:[%s3026_s7 + $0x188] sm:$0xff] %vm1705_vm1, %v1646_v20 }
 0x360   :  { %v1650_v53 = vpop.f32.mrb[132].mxu0 }
 0x361   :  { %v1651_v54 = vadd.f32 %v2681_v18, %v1650_v53  ;;  %v1652_v55 = vpop.f32.mrb[133].mxu0 }
 0x362   :  { %v1653_v59 = vpop.f32.mrb[134].mxu0 }
 0x363   :  { %1756 = vst.msk [vmem:[%s3026_s7 + $0x190] sm:$0xff] %vm1705_vm1, %v1651_v54  ;;  %v1654_v31 = vadd.f32 %v2681_v18, %v1653_v59  ;;  %v1655_v60 = vpop.f32.mrb[135].mxu0 }
 0x365   :  { %1757 = vst.msk [vmem:[%s3026_s7 + $0x198] sm:$0xff] %vm1705_vm1, %v1654_v31 }
 0x368   :  { %v1658_v6 = vpop.f32.mrb[136].mxu0 }
 0x369   :  { %v1659_v61 = vadd.f32 %v2681_v18, %v1658_v6  ;;  %v1660_v39 = vpop.f32.mrb[137].mxu0 }
 0x36a   :  { %v1661_v62 = vpop.f32.mrb[138].mxu0 }
 0x36b   :  { %1758 = vst.msk [vmem:[%s3026_s7 + $0x1a0] sm:$0xff] %vm1705_vm1, %v1659_v61  ;;  %v1662_v63 = vadd.f32 %v2681_v18, %v1661_v62  ;;  %v1663_v47 = vpop.f32.mrb[139].mxu0 }
 0x36d   :  { %1759 = vst.msk [vmem:[%s3026_s7 + $0x1a8] sm:$0xff] %vm1705_vm1, %v1662_v63 }
 0x370   :  { %v1666_v0 = vpop.f32.mrb[140].mxu0 }
 0x371   :  { %v1667_v9 = vadd.f32 %v2681_v18, %v1666_v0  ;;  %v1668_v51 = vpop.f32.mrb[141].mxu0 }
 0x372   :  { %v1669_v8 = vpop.f32.mrb[142].mxu0 }
 0x373   :  { %1760 = vst.msk [vmem:[%s3026_s7 + $0x1b0] sm:$0xff] %vm1705_vm1, %v1667_v9  ;;  %v1670_v26 = vadd.f32 %v2681_v18, %v1669_v8  ;;  %v1671_v28 = vpop.f32.mrb[143].mxu0 }
 0x375   :  { %1761 = vst.msk [vmem:[%s3026_s7 + $0x1b8] sm:$0xff] %vm1705_vm1, %v1670_v26 }
 0x378   :  { %v1674_v56 = vpop.f32.mrb[144].mxu0 }
 0x379   :  { %v1675_v58 = vadd.f32 %v2681_v18, %v1674_v56  ;;  %v1676_v25 = vpop.f32.mrb[145].mxu0 }
 0x37a   :  { %v1677_v13 = vpop.f32.mrb[146].mxu0 }
 0x37b   :  { %1762 = vst.msk [vmem:[%s3026_s7 + $0x1c0] sm:$0xff] %vm1705_vm1, %v1675_v58  ;;  %v1678_v16 = vadd.f32 %v2681_v18, %v1677_v13  ;;  %v1679_v33 = vpop.f32.mrb[147].mxu0 }
 0x37d   :  { %1763 = vst.msk [vmem:[%s3026_s7 + $0x1c8] sm:$0xff] %vm1705_vm1, %v1678_v16 }
 0x380   :  { %v1682_v34 = vpop.f32.mrb[148].mxu0 }
 0x381   :  { %v1683_v5 = vadd.f32 %v2681_v18, %v1682_v34  ;;  %v1684_v1 = vpop.f32.mrb[149].mxu0 }
 0x382   :  { %v1685_v3 = vpop.f32.mrb[150].mxu0 }
 0x383   :  { %1764 = vst.msk [vmem:[%s3026_s7 + $0x1d0] sm:$0xff] %vm1705_vm1, %v1683_v5  ;;  %v1686_v50 = vadd.f32 %v2681_v18, %v1685_v3  ;;  %v1687_v4 = vpop.f32.mrb[151].mxu0 }
 0x385   :  { %1765 = vst.msk [vmem:[%s3026_s7 + $0x1d8] sm:$0xff] %vm1705_vm1, %v1686_v50 }
 0x388   :  { %v1690_v7 = vpop.f32.mrb[152].mxu0 }
 0x389   :  { %v1691_v10 = vadd.f32 %v2681_v18, %v1690_v7  ;;  %v1692_v11 = vpop.f32.mrb[153].mxu0 }
 0x38a   :  { %v1693_v12 = vpop.f32.mrb[154].mxu0 }
 0x38b   :  { %1766 = vst.msk [vmem:[%s3026_s7 + $0x1e0] sm:$0xff] %vm1705_vm1, %v1691_v10  ;;  %v1694_v14 = vadd.f32 %v2681_v18, %v1693_v12  ;;  %v1695_v15 = vpop.f32.mrb[155].mxu0 }
 0x38d   :  { %1767 = vst.msk [vmem:[%s3026_s7 + $0x1e8] sm:$0xff] %vm1705_vm1, %v1694_v14 }
 0x390   :  { %v1698_v17 = vpop.f32.mrb[156].mxu0 }
 0x391   :  { %v1699_v19 = vadd.f32 %v2681_v18, %v1698_v17  ;;  %v1700_v21 = vpop.f32.mrb[157].mxu0 }
 0x392   :  { %v1701_v22 = vpop.f32.mrb[158].mxu0 }
 0x393   :  { %1768 = vst.msk [vmem:[%s3026_s7 + $0x1f0] sm:$0xff] %vm1705_vm1, %v1699_v19  ;;  %v1702_v2 = vadd.f32 %v2681_v18, %v1701_v22  ;;  %v1703_v23 = vpop.f32.mrb[159].mxu0 }
 0x395   :  { %1769 = vst.msk [vmem:[%s3026_s7 + $0x1f8] sm:$0xff] %vm1705_vm1, %v1702_v2 }

</bundles_post_ra>
